<compile_context>
chip_gen: v5e
topology: v5e:2x2
jax: 0.10.0
libtpu: 0.0.40
codegen_flags: <defaults>
</compile_context>

<pallas_src>
import functools

import jax
import jax.numpy as jnp
from jax.experimental import pallas as pl
from jax.experimental.pallas import tpu as pltpu


# ----------------------------------------------------------------------------
# Fused kernel: num_layers LSTM layers + ReLU + Linear head in one pallas_call
# ----------------------------------------------------------------------------
def make_fused_kernel(num_layers, T, Bp, H, with_cont):
    """Build the fused kernel with static num_layers / T / Bp / H / with_cont."""

    def kernel(*args):
        # args = x_ref, [w_ih_t, w_hh_t, b] * num_layers, fc_w_t, fc_b,
        #        out_ref, (cont_ref if with_cont), seq_scratch
        x_ref = args[0]
        layer_w = args[1:1 + 3 * num_layers]
        fc_w_ref = args[1 + 3 * num_layers]
        fc_b_ref = args[2 + 3 * num_layers]
        out_ref = args[3 + 3 * num_layers]                 # (Bp, O)
        if with_cont:
            cont_ref = args[4 + 3 * num_layers]            # (T*Bp, H)
            seq_ref = args[5 + 3 * num_layers]             # scratch (T*Bp, H)
        else:
            seq_ref = args[4 + 3 * num_layers]             # scratch (T*Bp, H)

        # Lane mask: 2.0 on the g-gate lanes [2H, 3H), 1.0 elsewhere (hoisted).
        lane = jax.lax.broadcasted_iota(jnp.int32, (1, 4 * H), 1)
        g_scale = jnp.where((lane >= 2 * H) & (lane < 3 * H),
                            jnp.float32(2.0), jnp.float32(1.0))

        # Layer 0 reads the pre-flattened, sublane-aligned input slab directly.
        seq = x_ref[...]                                   # (T*Bp, D_in)

        for layer in range(num_layers):
            # Hoist weight loads above the recurrent loop.
            w_ih = layer_w[3 * layer][...]                 # (D_in, 4H)
            w_hh = layer_w[3 * layer + 1][...]             # (H, 4H)
            bias = layer_w[3 * layer + 2][...]             # (1, 4H)

            # Hoisted, non-recurrent input projection: one big MXU GEMM.
            # g-gate lanes pre-scaled by 2 here (off the serial path), so the
            # time loop only needs a single sigmoid pass.
            gx = (jnp.dot(seq, w_ih, preferred_element_type=jnp.float32)
                  + bias) * g_scale                        # (T*Bp, 4H)
            w_hh_s = w_hh * g_scale                        # g-columns x2 (tiny, hoisted)

            h = jnp.zeros((Bp, H), jnp.float32)
            c = jnp.zeros((Bp, H), jnp.float32)
            # Fully unrolled recurrent loop (static T): only h @ w_hh_s is on
            # the serial critical path; all slices are sublane-aligned.
            for t in range(T):
                gates = gx[t * Bp:(t + 1) * Bp, :] + jnp.dot(
                    h, w_hh_s, preferred_element_type=jnp.float32
                )                                          # (Bp, 4H)
                sig = jax.nn.sigmoid(gates)                # single full-width EUP pass
                i_g = sig[:, 0 * H:1 * H]
                f_g = sig[:, 1 * H:2 * H]
                g_g = 2.0 * sig[:, 2 * H:3 * H] - 1.0      # tanh(g) = 2*sigmoid(2g) - 1
                o_g = sig[:, 3 * H:4 * H]
                c = f_g * c + i_g * g_g
                h = o_g * jnp.tanh(c)
                seq_ref[t * Bp:(t + 1) * Bp, :] = h        # aligned 8-row block store
            seq = seq_ref[...]                             # (T*Bp, H), no relayout

        # Head: ReLU once over the whole slab (single lane-dense store when
        # continue_factor); last timestep's relu reused for the fc GEMM.
        cont = jnp.maximum(seq, 0.0)                       # (T*Bp, H)
        if with_cont:
            cont_ref[...] = cont
        last_relu = cont[(T - 1) * Bp:T * Bp, :]           # (Bp, H)
        out_ref[...] = (
            jnp.dot(last_relu, fc_w_ref[...], preferred_element_type=jnp.float32)
            + fc_b_ref[...]
        ).astype(out_ref.dtype)

    return kernel


# ----------------------------------------------------------------------------
# Wrapper
# ----------------------------------------------------------------------------
_VMEM_SPEC = pl.BlockSpec(memory_space=pltpu.MemorySpace.VMEM)
_SUBLANE = 8  # f32 sublane multiple


@functools.partial(jax.jit, static_argnames=("continue_factor",))
def lstm_main_forward(x_btd, layer_params, fc_w_t, fc_b, *, continue_factor):
    """x_btd: (B, T, D) -> (out (B, O), continue_out (B, T, H)) or just out."""
    B, T, D = x_btd.shape
    num_layers = len(layer_params)
    H = layer_params[0][1].shape[0]
    O = fc_w_t.shape[1]
    Bp = ((B + _SUBLANE - 1) // _SUBLANE) * _SUBLANE

    # Pad batch to the sublane multiple and flatten time-major to (T*Bp, D):
    # row t*Bp + b holds timestep t, batch b.  Tiny XLA op on ~KBs of data.
    x_pad = jnp.pad(x_btd, ((0, Bp - B), (0, 0), (0, 0)))
    x_flat = jnp.transpose(x_pad, (1, 0, 2)).reshape(T * Bp, D)

    flat_weights = []
    for (w_ih_t, w_hh_t, b) in layer_params:
        flat_weights += [w_ih_t, w_hh_t, b]

    kernel = make_fused_kernel(num_layers, T, Bp, H, with_cont=continue_factor)
    n_inputs = 1 + 3 * num_layers + 2

    out_shapes = [jax.ShapeDtypeStruct((Bp, O), jnp.float32)]
    out_specs = [_VMEM_SPEC]
    if continue_factor:
        out_shapes.append(jax.ShapeDtypeStruct((T * Bp, H), jnp.float32))
        out_specs.append(_VMEM_SPEC)

    results = pl.pallas_call(
        kernel,
        out_shape=tuple(out_shapes),
        in_specs=[_VMEM_SPEC] * n_inputs,
        out_specs=tuple(out_specs),
        scratch_shapes=[pltpu.VMEM((T * Bp, H), jnp.float32)],
    )(x_flat, *flat_weights, fc_w_t, fc_b)

    out = results[0][:B]
    if continue_factor:
        cont = results[1].reshape(T, Bp, H)[:, :B, :].transpose(1, 0, 2)  # (B, T, H)
        return out, cont
    return out


# ----------------------------------------------------------------------------
# Deterministic parameter init (PyTorch shapes; uniform(-1/sqrt(H), 1/sqrt(H)))
# ----------------------------------------------------------------------------
def init_params(key, input_dim, hidden_dim, num_layers, output_dim):
    H = hidden_dim
    bound = 1.0 / jnp.sqrt(jnp.float32(H))
    layer_params = []
    for layer in range(num_layers):
        d_in = input_dim if layer == 0 else hidden_dim
        key, k1, k2, k3, k4 = jax.random.split(key, 5)
        w_ih = jax.random.uniform(k1, (4 * H, d_in), jnp.float32, -bound, bound)
        w_hh = jax.random.uniform(k2, (4 * H, H), jnp.float32, -bound, bound)
        b_ih = jax.random.uniform(k3, (4 * H,), jnp.float32, -bound, bound)
        b_hh = jax.random.uniform(k4, (4 * H,), jnp.float32, -bound, bound)
        # Pre-transposed weights + combined bias (b_ih + b_hh).
        layer_params.append((w_ih.T, w_hh.T, (b_ih + b_hh)[None, :]))
    key, k5, k6 = jax.random.split(key, 3)
    fc_w = jax.random.uniform(k5, (output_dim, H), jnp.float32, -bound, bound)
    fc_b = jax.random.uniform(k6, (output_dim,), jnp.float32, -bound, bound)
    return tuple(layer_params), fc_w.T, fc_b[None, :]


# ----------------------------------------------------------------------------
# Pure-JAX reference (sanity check)
# ----------------------------------------------------------------------------
def reference_forward(x_btd, layer_params, fc_w_t, fc_b):
    B, T, _ = x_btd.shape
    h_seq = x_btd
    for (w_ih_t, w_hh_t, b) in layer_params:
        H = w_hh_t.shape[0]
        h = jnp.zeros((B, H), jnp.float32)
        c = jnp.zeros((B, H), jnp.float32)
        outs = []
        for t in range(T):
            gates = h_seq[:, t] @ w_ih_t + h @ w_hh_t + b
            i_g = jax.nn.sigmoid(gates[:, :H])
            f_g = jax.nn.sigmoid(gates[:, H:2 * H])
            g_g = jnp.tanh(gates[:, 2 * H:3 * H])
            o_g = jax.nn.sigmoid(gates[:, 3 * H:])
            c = f_g * c + i_g * g_g
            h = o_g * jnp.tanh(c)
            outs.append(h)
        h_seq = jnp.stack(outs, axis=1)
    cont = jnp.maximum(h_seq, 0.0)
    out = cont[:, -1] @ fc_w_t + fc_b
    return out, cont


# ----------------------------------------------------------------------------
# Main
# ----------------------------------------------------------------------------
if __name__ == "__main__":
    # Module hyperparameters (small, consistent with LSTM_main's forward).
    input_dim, hidden_dim, num_layers, output_dim = 16, 32, 2, 4
    dropout, continue_factor = 0.0, True
    batch, seq = 2, 8

    key = jax.random.PRNGKey(0)
    key, pkey, xkey = jax.random.split(key, 3)
    layer_params, fc_w_t, fc_b = init_params(
        pkey, input_dim, hidden_dim, num_layers, output_dim
    )
    x = jax.random.normal(xkey, (batch, seq, input_dim), jnp.float32)

    # continue_factor=True path: returns (out, continue_out).
    out, continue_out = lstm_main_forward(
        x, layer_params, fc_w_t, fc_b, continue_factor=True
    )
    out = jax.block_until_ready(out)
    continue_out = jax.block_until_ready(continue_out)

    # continue_factor=False path: returns out only (no cont compute/writeback).
    out_only = jax.block_until_ready(
        lstm_main_forward(x, layer_params, fc_w_t, fc_b, continue_factor=False)
    )

    # Sanity check against the pure-JAX reference.
    ref_out, ref_cont = reference_forward(x, layer_params, fc_w_t, fc_b)
    assert out.shape == (batch, output_dim)
    assert continue_out.shape == (batch, seq, hidden_dim)
    assert out_only.shape == (batch, output_dim)
    assert jnp.allclose(out, ref_out, atol=1e-4, rtol=1e-4)
    assert jnp.allclose(out_only, ref_out, atol=1e-4, rtol=1e-4)
    assert jnp.allclose(continue_out, ref_cont, atol=1e-4, rtol=1e-4)

    print("KERNEL_OK")
</pallas_src>

<mosaic_0001>
module attributes {stable_mosaic.version = 11 : i64} {
  func.func @kernel(%arg0: memref<64x16xf32, #tpu.memory_space<vmem>>, %arg1: memref<16x128xf32, #tpu.memory_space<vmem>>, %arg2: memref<32x128xf32, #tpu.memory_space<vmem>>, %arg3: memref<1x128xf32, #tpu.memory_space<vmem>>, %arg4: memref<32x128xf32, #tpu.memory_space<vmem>>, %arg5: memref<32x128xf32, #tpu.memory_space<vmem>>, %arg6: memref<1x128xf32, #tpu.memory_space<vmem>>, %arg7: memref<32x4xf32, #tpu.memory_space<vmem>>, %arg8: memref<1x4xf32, #tpu.memory_space<vmem>>, %arg9: memref<8x4xf32, #tpu.memory_space<vmem>>, %arg10: memref<64x32xf32, #tpu.memory_space<vmem>>, %arg11: memref<64x32xf32, #tpu.memory_space<vmem>>) attributes {dimension_semantics = [], scalar_prefetch = 0 : i64, scratch_operands = 1 : i64, tpu.core_type = #tpu.core_type<tc>} {
    %0 = tpu.iota {dimensions = array<i32: 1>} : vector<1x128xi32>
    %c64_i32 = arith.constant 64 : i32
    %1 = vector.broadcast %c64_i32 : i32 to vector<1x128xi32>
    %2 = arith.cmpi sge, %0, %1 : vector<1x128xi32>
    %c96_i32 = arith.constant 96 : i32
    %3 = vector.broadcast %c96_i32 : i32 to vector<1x128xi32>
    %4 = arith.cmpi slt, %0, %3 : vector<1x128xi32>
    %5 = arith.andi %2, %4 : vector<1x128xi1>
    %cst = arith.constant 2.000000e+00 : f32
    %cst_0 = arith.constant 1.000000e+00 : f32
    %6 = vector.broadcast %cst : f32 to vector<1x128xf32>
    %7 = vector.broadcast %cst_0 : f32 to vector<1x128xf32>
    %8 = arith.select %5, %6, %7 : vector<1x128xi1>, vector<1x128xf32>
    %c0 = arith.constant 0 : index
    %c0_1 = arith.constant 0 : index
    %9 = vector.load %arg0[%c0, %c0_1] : memref<64x16xf32, #tpu.memory_space<vmem>>, vector<64x16xf32>
    %c0_2 = arith.constant 0 : index
    %c0_3 = arith.constant 0 : index
    %10 = vector.load %arg1[%c0_2, %c0_3] : memref<16x128xf32, #tpu.memory_space<vmem>>, vector<16x128xf32>
    %c0_4 = arith.constant 0 : index
    %c0_5 = arith.constant 0 : index
    %11 = vector.load %arg2[%c0_4, %c0_5] : memref<32x128xf32, #tpu.memory_space<vmem>>, vector<32x128xf32>
    %c0_6 = arith.constant 0 : index
    %c0_7 = arith.constant 0 : index
    %12 = vector.load %arg3[%c0_6, %c0_7] : memref<1x128xf32, #tpu.memory_space<vmem>>, vector<1x128xf32>
    %cst_8 = arith.constant dense<0.000000e+00> : vector<64x128xf32>
    %13 = tpu.matmul %9, %10, %cst_8 {dimension_numbers = #tpu.dot_dimension_numbers<[1], [0], [0], [1], [0, 0, 1, 1], [], []>} : vector<64x16xf32>, vector<16x128xf32>, vector<64x128xf32> -> vector<64x128xf32>
    %14 = vector.broadcast %12 : vector<1x128xf32> to vector<64x128xf32>
    %15 = arith.addf %13, %14 : vector<64x128xf32>
    %16 = vector.broadcast %8 : vector<1x128xf32> to vector<64x128xf32>
    %17 = arith.mulf %15, %16 : vector<64x128xf32>
    %18 = vector.broadcast %8 : vector<1x128xf32> to vector<32x128xf32>
    %19 = arith.mulf %11, %18 : vector<32x128xf32>
    %cst_9 = arith.constant 0.000000e+00 : f32
    %20 = vector.broadcast %cst_9 : f32 to vector<8x32xf32>
    %cst_10 = arith.constant 0.000000e+00 : f32
    %21 = vector.broadcast %cst_10 : f32 to vector<8x32xf32>
    %22 = vector.extract_strided_slice %17 {offsets = [0, 0], sizes = [8, 128], strides = [1, 1]} : vector<64x128xf32> to vector<8x128xf32>
    %cst_11 = arith.constant dense<0.000000e+00> : vector<8x128xf32>
    %23 = tpu.matmul %20, %19, %cst_11 {dimension_numbers = #tpu.dot_dimension_numbers<[1], [0], [0], [1], [0, 0, 1, 1], [], []>} : vector<8x32xf32>, vector<32x128xf32>, vector<8x128xf32> -> vector<8x128xf32>
    %24 = arith.addf %22, %23 : vector<8x128xf32>
    %25 = arith.negf %24 : vector<8x128xf32>
    %26 = math.exp %25 : vector<8x128xf32>
    %cst_12 = arith.constant 1.000000e+00 : f32
    %27 = vector.broadcast %cst_12 : f32 to vector<8x128xf32>
    %28 = arith.addf %27, %26 : vector<8x128xf32>
    %29 = arith.divf %27, %28 : vector<8x128xf32>
    %30 = vector.extract_strided_slice %29 {offsets = [0, 0], sizes = [8, 32], strides = [1, 1]} : vector<8x128xf32> to vector<8x32xf32>
    %31 = vector.extract_strided_slice %29 {offsets = [0, 32], sizes = [8, 32], strides = [1, 1]} : vector<8x128xf32> to vector<8x32xf32>
    %32 = vector.extract_strided_slice %29 {offsets = [0, 64], sizes = [8, 32], strides = [1, 1]} : vector<8x128xf32> to vector<8x32xf32>
    %cst_13 = arith.constant 2.000000e+00 : f32
    %33 = vector.broadcast %cst_13 : f32 to vector<8x32xf32>
    %34 = arith.mulf %33, %32 : vector<8x32xf32>
    %cst_14 = arith.constant 1.000000e+00 : f32
    %35 = vector.broadcast %cst_14 : f32 to vector<8x32xf32>
    %36 = arith.subf %34, %35 : vector<8x32xf32>
    %37 = vector.extract_strided_slice %29 {offsets = [0, 96], sizes = [8, 32], strides = [1, 1]} : vector<8x128xf32> to vector<8x32xf32>
    %38 = arith.mulf %31, %21 : vector<8x32xf32>
    %39 = arith.mulf %30, %36 : vector<8x32xf32>
    %40 = arith.addf %38, %39 : vector<8x32xf32>
    %41 = math.tanh %40 : vector<8x32xf32>
    %42 = arith.mulf %37, %41 : vector<8x32xf32>
    %c0_15 = arith.constant 0 : index
    %c0_16 = arith.constant 0 : index
    %43 = vector.load %arg11[%c0_15, %c0_16] : memref<64x32xf32, #tpu.memory_space<vmem>>, vector<8x32xf32>
    tpu.vector_store %arg11[%c0_15, %c0_16], %42 {strides = array<i32>} : memref<64x32xf32, #tpu.memory_space<vmem>>, vector<8x32xf32>,
    %44 = vector.extract_strided_slice %17 {offsets = [8, 0], sizes = [8, 128], strides = [1, 1]} : vector<64x128xf32> to vector<8x128xf32>
    %cst_17 = arith.constant dense<0.000000e+00> : vector<8x128xf32>
    %45 = tpu.matmul %42, %19, %cst_17 {dimension_numbers = #tpu.dot_dimension_numbers<[1], [0], [0], [1], [0, 0, 1, 1], [], []>} : vector<8x32xf32>, vector<32x128xf32>, vector<8x128xf32> -> vector<8x128xf32>
    %46 = arith.addf %44, %45 : vector<8x128xf32>
    %47 = arith.negf %46 : vector<8x128xf32>
    %48 = math.exp %47 : vector<8x128xf32>
    %cst_18 = arith.constant 1.000000e+00 : f32
    %49 = vector.broadcast %cst_18 : f32 to vector<8x128xf32>
    %50 = arith.addf %49, %48 : vector<8x128xf32>
    %51 = arith.divf %49, %50 : vector<8x128xf32>
    %52 = vector.extract_strided_slice %51 {offsets = [0, 0], sizes = [8, 32], strides = [1, 1]} : vector<8x128xf32> to vector<8x32xf32>
    %53 = vector.extract_strided_slice %51 {offsets = [0, 32], sizes = [8, 32], strides = [1, 1]} : vector<8x128xf32> to vector<8x32xf32>
    %54 = vector.extract_strided_slice %51 {offsets = [0, 64], sizes = [8, 32], strides = [1, 1]} : vector<8x128xf32> to vector<8x32xf32>
    %cst_19 = arith.constant 2.000000e+00 : f32
    %55 = vector.broadcast %cst_19 : f32 to vector<8x32xf32>
    %56 = arith.mulf %55, %54 : vector<8x32xf32>
    %cst_20 = arith.constant 1.000000e+00 : f32
    %57 = vector.broadcast %cst_20 : f32 to vector<8x32xf32>
    %58 = arith.subf %56, %57 : vector<8x32xf32>
    %59 = vector.extract_strided_slice %51 {offsets = [0, 96], sizes = [8, 32], strides = [1, 1]} : vector<8x128xf32> to vector<8x32xf32>
    %60 = arith.mulf %53, %40 : vector<8x32xf32>
    %61 = arith.mulf %52, %58 : vector<8x32xf32>
    %62 = arith.addf %60, %61 : vector<8x32xf32>
    %63 = math.tanh %62 : vector<8x32xf32>
    %64 = arith.mulf %59, %63 : vector<8x32xf32>
    %c8 = arith.constant 8 : index
    %c0_21 = arith.constant 0 : index
    %65 = vector.load %arg11[%c8, %c0_21] : memref<64x32xf32, #tpu.memory_space<vmem>>, vector<8x32xf32>
    tpu.vector_store %arg11[%c8, %c0_21], %64 {strides = array<i32>} : memref<64x32xf32, #tpu.memory_space<vmem>>, vector<8x32xf32>,
    %66 = vector.extract_strided_slice %17 {offsets = [16, 0], sizes = [8, 128], strides = [1, 1]} : vector<64x128xf32> to vector<8x128xf32>
    %cst_22 = arith.constant dense<0.000000e+00> : vector<8x128xf32>
    %67 = tpu.matmul %64, %19, %cst_22 {dimension_numbers = #tpu.dot_dimension_numbers<[1], [0], [0], [1], [0, 0, 1, 1], [], []>} : vector<8x32xf32>, vector<32x128xf32>, vector<8x128xf32> -> vector<8x128xf32>
    %68 = arith.addf %66, %67 : vector<8x128xf32>
    %69 = arith.negf %68 : vector<8x128xf32>
    %70 = math.exp %69 : vector<8x128xf32>
    %cst_23 = arith.constant 1.000000e+00 : f32
    %71 = vector.broadcast %cst_23 : f32 to vector<8x128xf32>
    %72 = arith.addf %71, %70 : vector<8x128xf32>
    %73 = arith.divf %71, %72 : vector<8x128xf32>
    %74 = vector.extract_strided_slice %73 {offsets = [0, 0], sizes = [8, 32], strides = [1, 1]} : vector<8x128xf32> to vector<8x32xf32>
    %75 = vector.extract_strided_slice %73 {offsets = [0, 32], sizes = [8, 32], strides = [1, 1]} : vector<8x128xf32> to vector<8x32xf32>
    %76 = vector.extract_strided_slice %73 {offsets = [0, 64], sizes = [8, 32], strides = [1, 1]} : vector<8x128xf32> to vector<8x32xf32>
    %cst_24 = arith.constant 2.000000e+00 : f32
    %77 = vector.broadcast %cst_24 : f32 to vector<8x32xf32>
    %78 = arith.mulf %77, %76 : vector<8x32xf32>
    %cst_25 = arith.constant 1.000000e+00 : f32
    %79 = vector.broadcast %cst_25 : f32 to vector<8x32xf32>
    %80 = arith.subf %78, %79 : vector<8x32xf32>
    %81 = vector.extract_strided_slice %73 {offsets = [0, 96], sizes = [8, 32], strides = [1, 1]} : vector<8x128xf32> to vector<8x32xf32>
    %82 = arith.mulf %75, %62 : vector<8x32xf32>
    %83 = arith.mulf %74, %80 : vector<8x32xf32>
    %84 = arith.addf %82, %83 : vector<8x32xf32>
    %85 = math.tanh %84 : vector<8x32xf32>
    %86 = arith.mulf %81, %85 : vector<8x32xf32>
    %c16 = arith.constant 16 : index
    %c0_26 = arith.constant 0 : index
    %87 = vector.load %arg11[%c16, %c0_26] : memref<64x32xf32, #tpu.memory_space<vmem>>, vector<8x32xf32>
    tpu.vector_store %arg11[%c16, %c0_26], %86 {strides = array<i32>} : memref<64x32xf32, #tpu.memory_space<vmem>>, vector<8x32xf32>,
    %88 = vector.extract_strided_slice %17 {offsets = [24, 0], sizes = [8, 128], strides = [1, 1]} : vector<64x128xf32> to vector<8x128xf32>
    %cst_27 = arith.constant dense<0.000000e+00> : vector<8x128xf32>
    %89 = tpu.matmul %86, %19, %cst_27 {dimension_numbers = #tpu.dot_dimension_numbers<[1], [0], [0], [1], [0, 0, 1, 1], [], []>} : vector<8x32xf32>, vector<32x128xf32>, vector<8x128xf32> -> vector<8x128xf32>
    %90 = arith.addf %88, %89 : vector<8x128xf32>
    %91 = arith.negf %90 : vector<8x128xf32>
    %92 = math.exp %91 : vector<8x128xf32>
    %cst_28 = arith.constant 1.000000e+00 : f32
    %93 = vector.broadcast %cst_28 : f32 to vector<8x128xf32>
    %94 = arith.addf %93, %92 : vector<8x128xf32>
    %95 = arith.divf %93, %94 : vector<8x128xf32>
    %96 = vector.extract_strided_slice %95 {offsets = [0, 0], sizes = [8, 32], strides = [1, 1]} : vector<8x128xf32> to vector<8x32xf32>
    %97 = vector.extract_strided_slice %95 {offsets = [0, 32], sizes = [8, 32], strides = [1, 1]} : vector<8x128xf32> to vector<8x32xf32>
    %98 = vector.extract_strided_slice %95 {offsets = [0, 64], sizes = [8, 32], strides = [1, 1]} : vector<8x128xf32> to vector<8x32xf32>
    %cst_29 = arith.constant 2.000000e+00 : f32
    %99 = vector.broadcast %cst_29 : f32 to vector<8x32xf32>
    %100 = arith.mulf %99, %98 : vector<8x32xf32>
    %cst_30 = arith.constant 1.000000e+00 : f32
    %101 = vector.broadcast %cst_30 : f32 to vector<8x32xf32>
    %102 = arith.subf %100, %101 : vector<8x32xf32>
    %103 = vector.extract_strided_slice %95 {offsets = [0, 96], sizes = [8, 32], strides = [1, 1]} : vector<8x128xf32> to vector<8x32xf32>
    %104 = arith.mulf %97, %84 : vector<8x32xf32>
    %105 = arith.mulf %96, %102 : vector<8x32xf32>
    %106 = arith.addf %104, %105 : vector<8x32xf32>
    %107 = math.tanh %106 : vector<8x32xf32>
    %108 = arith.mulf %103, %107 : vector<8x32xf32>
    %c24 = arith.constant 24 : index
    %c0_31 = arith.constant 0 : index
    %109 = vector.load %arg11[%c24, %c0_31] : memref<64x32xf32, #tpu.memory_space<vmem>>, vector<8x32xf32>
    tpu.vector_store %arg11[%c24, %c0_31], %108 {strides = array<i32>} : memref<64x32xf32, #tpu.memory_space<vmem>>, vector<8x32xf32>,
    %110 = vector.extract_strided_slice %17 {offsets = [32, 0], sizes = [8, 128], strides = [1, 1]} : vector<64x128xf32> to vector<8x128xf32>
    %cst_32 = arith.constant dense<0.000000e+00> : vector<8x128xf32>
    %111 = tpu.matmul %108, %19, %cst_32 {dimension_numbers = #tpu.dot_dimension_numbers<[1], [0], [0], [1], [0, 0, 1, 1], [], []>} : vector<8x32xf32>, vector<32x128xf32>, vector<8x128xf32> -> vector<8x128xf32>
    %112 = arith.addf %110, %111 : vector<8x128xf32>
    %113 = arith.negf %112 : vector<8x128xf32>
    %114 = math.exp %113 : vector<8x128xf32>
    %cst_33 = arith.constant 1.000000e+00 : f32
    %115 = vector.broadcast %cst_33 : f32 to vector<8x128xf32>
    %116 = arith.addf %115, %114 : vector<8x128xf32>
    %117 = arith.divf %115, %116 : vector<8x128xf32>
    %118 = vector.extract_strided_slice %117 {offsets = [0, 0], sizes = [8, 32], strides = [1, 1]} : vector<8x128xf32> to vector<8x32xf32>
    %119 = vector.extract_strided_slice %117 {offsets = [0, 32], sizes = [8, 32], strides = [1, 1]} : vector<8x128xf32> to vector<8x32xf32>
    %120 = vector.extract_strided_slice %117 {offsets = [0, 64], sizes = [8, 32], strides = [1, 1]} : vector<8x128xf32> to vector<8x32xf32>
    %cst_34 = arith.constant 2.000000e+00 : f32
    %121 = vector.broadcast %cst_34 : f32 to vector<8x32xf32>
    %122 = arith.mulf %121, %120 : vector<8x32xf32>
    %cst_35 = arith.constant 1.000000e+00 : f32
    %123 = vector.broadcast %cst_35 : f32 to vector<8x32xf32>
    %124 = arith.subf %122, %123 : vector<8x32xf32>
    %125 = vector.extract_strided_slice %117 {offsets = [0, 96], sizes = [8, 32], strides = [1, 1]} : vector<8x128xf32> to vector<8x32xf32>
    %126 = arith.mulf %119, %106 : vector<8x32xf32>
    %127 = arith.mulf %118, %124 : vector<8x32xf32>
    %128 = arith.addf %126, %127 : vector<8x32xf32>
    %129 = math.tanh %128 : vector<8x32xf32>
    %130 = arith.mulf %125, %129 : vector<8x32xf32>
    %c32 = arith.constant 32 : index
    %c0_36 = arith.constant 0 : index
    %131 = vector.load %arg11[%c32, %c0_36] : memref<64x32xf32, #tpu.memory_space<vmem>>, vector<8x32xf32>
    tpu.vector_store %arg11[%c32, %c0_36], %130 {strides = array<i32>} : memref<64x32xf32, #tpu.memory_space<vmem>>, vector<8x32xf32>,
    %132 = vector.extract_strided_slice %17 {offsets = [40, 0], sizes = [8, 128], strides = [1, 1]} : vector<64x128xf32> to vector<8x128xf32>
    %cst_37 = arith.constant dense<0.000000e+00> : vector<8x128xf32>
    %133 = tpu.matmul %130, %19, %cst_37 {dimension_numbers = #tpu.dot_dimension_numbers<[1], [0], [0], [1], [0, 0, 1, 1], [], []>} : vector<8x32xf32>, vector<32x128xf32>, vector<8x128xf32> -> vector<8x128xf32>
    %134 = arith.addf %132, %133 : vector<8x128xf32>
    %135 = arith.negf %134 : vector<8x128xf32>
    %136 = math.exp %135 : vector<8x128xf32>
    %cst_38 = arith.constant 1.000000e+00 : f32
    %137 = vector.broadcast %cst_38 : f32 to vector<8x128xf32>
    %138 = arith.addf %137, %136 : vector<8x128xf32>
    %139 = arith.divf %137, %138 : vector<8x128xf32>
    %140 = vector.extract_strided_slice %139 {offsets = [0, 0], sizes = [8, 32], strides = [1, 1]} : vector<8x128xf32> to vector<8x32xf32>
    %141 = vector.extract_strided_slice %139 {offsets = [0, 32], sizes = [8, 32], strides = [1, 1]} : vector<8x128xf32> to vector<8x32xf32>
    %142 = vector.extract_strided_slice %139 {offsets = [0, 64], sizes = [8, 32], strides = [1, 1]} : vector<8x128xf32> to vector<8x32xf32>
    %cst_39 = arith.constant 2.000000e+00 : f32
    %143 = vector.broadcast %cst_39 : f32 to vector<8x32xf32>
    %144 = arith.mulf %143, %142 : vector<8x32xf32>
    %cst_40 = arith.constant 1.000000e+00 : f32
    %145 = vector.broadcast %cst_40 : f32 to vector<8x32xf32>
    %146 = arith.subf %144, %145 : vector<8x32xf32>
    %147 = vector.extract_strided_slice %139 {offsets = [0, 96], sizes = [8, 32], strides = [1, 1]} : vector<8x128xf32> to vector<8x32xf32>
    %148 = arith.mulf %141, %128 : vector<8x32xf32>
    %149 = arith.mulf %140, %146 : vector<8x32xf32>
    %150 = arith.addf %148, %149 : vector<8x32xf32>
    %151 = math.tanh %150 : vector<8x32xf32>
    %152 = arith.mulf %147, %151 : vector<8x32xf32>
    %c40 = arith.constant 40 : index
    %c0_41 = arith.constant 0 : index
    %153 = vector.load %arg11[%c40, %c0_41] : memref<64x32xf32, #tpu.memory_space<vmem>>, vector<8x32xf32>
    tpu.vector_store %arg11[%c40, %c0_41], %152 {strides = array<i32>} : memref<64x32xf32, #tpu.memory_space<vmem>>, vector<8x32xf32>,
    %154 = vector.extract_strided_slice %17 {offsets = [48, 0], sizes = [8, 128], strides = [1, 1]} : vector<64x128xf32> to vector<8x128xf32>
    %cst_42 = arith.constant dense<0.000000e+00> : vector<8x128xf32>
    %155 = tpu.matmul %152, %19, %cst_42 {dimension_numbers = #tpu.dot_dimension_numbers<[1], [0], [0], [1], [0, 0, 1, 1], [], []>} : vector<8x32xf32>, vector<32x128xf32>, vector<8x128xf32> -> vector<8x128xf32>
    %156 = arith.addf %154, %155 : vector<8x128xf32>
    %157 = arith.negf %156 : vector<8x128xf32>
    %158 = math.exp %157 : vector<8x128xf32>
    %cst_43 = arith.constant 1.000000e+00 : f32
    %159 = vector.broadcast %cst_43 : f32 to vector<8x128xf32>
    %160 = arith.addf %159, %158 : vector<8x128xf32>
    %161 = arith.divf %159, %160 : vector<8x128xf32>
    %162 = vector.extract_strided_slice %161 {offsets = [0, 0], sizes = [8, 32], strides = [1, 1]} : vector<8x128xf32> to vector<8x32xf32>
    %163 = vector.extract_strided_slice %161 {offsets = [0, 32], sizes = [8, 32], strides = [1, 1]} : vector<8x128xf32> to vector<8x32xf32>
    %164 = vector.extract_strided_slice %161 {offsets = [0, 64], sizes = [8, 32], strides = [1, 1]} : vector<8x128xf32> to vector<8x32xf32>
    %cst_44 = arith.constant 2.000000e+00 : f32
    %165 = vector.broadcast %cst_44 : f32 to vector<8x32xf32>
    %166 = arith.mulf %165, %164 : vector<8x32xf32>
    %cst_45 = arith.constant 1.000000e+00 : f32
    %167 = vector.broadcast %cst_45 : f32 to vector<8x32xf32>
    %168 = arith.subf %166, %167 : vector<8x32xf32>
    %169 = vector.extract_strided_slice %161 {offsets = [0, 96], sizes = [8, 32], strides = [1, 1]} : vector<8x128xf32> to vector<8x32xf32>
    %170 = arith.mulf %163, %150 : vector<8x32xf32>
    %171 = arith.mulf %162, %168 : vector<8x32xf32>
    %172 = arith.addf %170, %171 : vector<8x32xf32>
    %173 = math.tanh %172 : vector<8x32xf32>
    %174 = arith.mulf %169, %173 : vector<8x32xf32>
    %c48 = arith.constant 48 : index
    %c0_46 = arith.constant 0 : index
    %175 = vector.load %arg11[%c48, %c0_46] : memref<64x32xf32, #tpu.memory_space<vmem>>, vector<8x32xf32>
    tpu.vector_store %arg11[%c48, %c0_46], %174 {strides = array<i32>} : memref<64x32xf32, #tpu.memory_space<vmem>>, vector<8x32xf32>,
    %176 = vector.extract_strided_slice %17 {offsets = [56, 0], sizes = [8, 128], strides = [1, 1]} : vector<64x128xf32> to vector<8x128xf32>
    %cst_47 = arith.constant dense<0.000000e+00> : vector<8x128xf32>
    %177 = tpu.matmul %174, %19, %cst_47 {dimension_numbers = #tpu.dot_dimension_numbers<[1], [0], [0], [1], [0, 0, 1, 1], [], []>} : vector<8x32xf32>, vector<32x128xf32>, vector<8x128xf32> -> vector<8x128xf32>
    %178 = arith.addf %176, %177 : vector<8x128xf32>
    %179 = arith.negf %178 : vector<8x128xf32>
    %180 = math.exp %179 : vector<8x128xf32>
    %cst_48 = arith.constant 1.000000e+00 : f32
    %181 = vector.broadcast %cst_48 : f32 to vector<8x128xf32>
    %182 = arith.addf %181, %180 : vector<8x128xf32>
    %183 = arith.divf %181, %182 : vector<8x128xf32>
    %184 = vector.extract_strided_slice %183 {offsets = [0, 0], sizes = [8, 32], strides = [1, 1]} : vector<8x128xf32> to vector<8x32xf32>
    %185 = vector.extract_strided_slice %183 {offsets = [0, 32], sizes = [8, 32], strides = [1, 1]} : vector<8x128xf32> to vector<8x32xf32>
    %186 = vector.extract_strided_slice %183 {offsets = [0, 64], sizes = [8, 32], strides = [1, 1]} : vector<8x128xf32> to vector<8x32xf32>
    %cst_49 = arith.constant 2.000000e+00 : f32
    %187 = vector.broadcast %cst_49 : f32 to vector<8x32xf32>
    %188 = arith.mulf %187, %186 : vector<8x32xf32>
    %cst_50 = arith.constant 1.000000e+00 : f32
    %189 = vector.broadcast %cst_50 : f32 to vector<8x32xf32>
    %190 = arith.subf %188, %189 : vector<8x32xf32>
    %191 = vector.extract_strided_slice %183 {offsets = [0, 96], sizes = [8, 32], strides = [1, 1]} : vector<8x128xf32> to vector<8x32xf32>
    %192 = arith.mulf %185, %172 : vector<8x32xf32>
    %193 = arith.mulf %184, %190 : vector<8x32xf32>
    %194 = arith.addf %192, %193 : vector<8x32xf32>
    %195 = math.tanh %194 : vector<8x32xf32>
    %196 = arith.mulf %191, %195 : vector<8x32xf32>
    %c56 = arith.constant 56 : index
    %c0_51 = arith.constant 0 : index
    %197 = vector.load %arg11[%c56, %c0_51] : memref<64x32xf32, #tpu.memory_space<vmem>>, vector<8x32xf32>
    tpu.vector_store %arg11[%c56, %c0_51], %196 {strides = array<i32>} : memref<64x32xf32, #tpu.memory_space<vmem>>, vector<8x32xf32>,
    %c0_52 = arith.constant 0 : index
    %c0_53 = arith.constant 0 : index
    %198 = vector.load %arg11[%c0_52, %c0_53] : memref<64x32xf32, #tpu.memory_space<vmem>>, vector<64x32xf32>
    %c0_54 = arith.constant 0 : index
    %c0_55 = arith.constant 0 : index
    %199 = vector.load %arg4[%c0_54, %c0_55] : memref<32x128xf32, #tpu.memory_space<vmem>>, vector<32x128xf32>
    %c0_56 = arith.constant 0 : index
    %c0_57 = arith.constant 0 : index
    %200 = vector.load %arg5[%c0_56, %c0_57] : memref<32x128xf32, #tpu.memory_space<vmem>>, vector<32x128xf32>
    %c0_58 = arith.constant 0 : index
    %c0_59 = arith.constant 0 : index
    %201 = vector.load %arg6[%c0_58, %c0_59] : memref<1x128xf32, #tpu.memory_space<vmem>>, vector<1x128xf32>
    %cst_60 = arith.constant dense<0.000000e+00> : vector<64x128xf32>
    %202 = tpu.matmul %198, %199, %cst_60 {dimension_numbers = #tpu.dot_dimension_numbers<[1], [0], [0], [1], [0, 0, 1, 1], [], []>} : vector<64x32xf32>, vector<32x128xf32>, vector<64x128xf32> -> vector<64x128xf32>
    %203 = vector.broadcast %201 : vector<1x128xf32> to vector<64x128xf32>
    %204 = arith.addf %202, %203 : vector<64x128xf32>
    %205 = vector.broadcast %8 : vector<1x128xf32> to vector<64x128xf32>
    %206 = arith.mulf %204, %205 : vector<64x128xf32>
    %207 = vector.broadcast %8 : vector<1x128xf32> to vector<32x128xf32>
    %208 = arith.mulf %200, %207 : vector<32x128xf32>
    %cst_61 = arith.constant 0.000000e+00 : f32
    %209 = vector.broadcast %cst_61 : f32 to vector<8x32xf32>
    %cst_62 = arith.constant 0.000000e+00 : f32
    %210 = vector.broadcast %cst_62 : f32 to vector<8x32xf32>
    %211 = vector.extract_strided_slice %206 {offsets = [0, 0], sizes = [8, 128], strides = [1, 1]} : vector<64x128xf32> to vector<8x128xf32>
    %cst_63 = arith.constant dense<0.000000e+00> : vector<8x128xf32>
    %212 = tpu.matmul %209, %208, %cst_63 {dimension_numbers = #tpu.dot_dimension_numbers<[1], [0], [0], [1], [0, 0, 1, 1], [], []>} : vector<8x32xf32>, vector<32x128xf32>, vector<8x128xf32> -> vector<8x128xf32>
    %213 = arith.addf %211, %212 : vector<8x128xf32>
    %214 = arith.negf %213 : vector<8x128xf32>
    %215 = math.exp %214 : vector<8x128xf32>
    %cst_64 = arith.constant 1.000000e+00 : f32
    %216 = vector.broadcast %cst_64 : f32 to vector<8x128xf32>
    %217 = arith.addf %216, %215 : vector<8x128xf32>
    %218 = arith.divf %216, %217 : vector<8x128xf32>
    %219 = vector.extract_strided_slice %218 {offsets = [0, 0], sizes = [8, 32], strides = [1, 1]} : vector<8x128xf32> to vector<8x32xf32>
    %220 = vector.extract_strided_slice %218 {offsets = [0, 32], sizes = [8, 32], strides = [1, 1]} : vector<8x128xf32> to vector<8x32xf32>
    %221 = vector.extract_strided_slice %218 {offsets = [0, 64], sizes = [8, 32], strides = [1, 1]} : vector<8x128xf32> to vector<8x32xf32>
    %cst_65 = arith.constant 2.000000e+00 : f32
    %222 = vector.broadcast %cst_65 : f32 to vector<8x32xf32>
    %223 = arith.mulf %222, %221 : vector<8x32xf32>
    %cst_66 = arith.constant 1.000000e+00 : f32
    %224 = vector.broadcast %cst_66 : f32 to vector<8x32xf32>
    %225 = arith.subf %223, %224 : vector<8x32xf32>
    %226 = vector.extract_strided_slice %218 {offsets = [0, 96], sizes = [8, 32], strides = [1, 1]} : vector<8x128xf32> to vector<8x32xf32>
    %227 = arith.mulf %220, %210 : vector<8x32xf32>
    %228 = arith.mulf %219, %225 : vector<8x32xf32>
    %229 = arith.addf %227, %228 : vector<8x32xf32>
    %230 = math.tanh %229 : vector<8x32xf32>
    %231 = arith.mulf %226, %230 : vector<8x32xf32>
    %c0_67 = arith.constant 0 : index
    %c0_68 = arith.constant 0 : index
    %232 = vector.load %arg11[%c0_67, %c0_68] : memref<64x32xf32, #tpu.memory_space<vmem>>, vector<8x32xf32>
    tpu.vector_store %arg11[%c0_67, %c0_68], %231 {strides = array<i32>} : memref<64x32xf32, #tpu.memory_space<vmem>>, vector<8x32xf32>,
    %233 = vector.extract_strided_slice %206 {offsets = [8, 0], sizes = [8, 128], strides = [1, 1]} : vector<64x128xf32> to vector<8x128xf32>
    %cst_69 = arith.constant dense<0.000000e+00> : vector<8x128xf32>
    %234 = tpu.matmul %231, %208, %cst_69 {dimension_numbers = #tpu.dot_dimension_numbers<[1], [0], [0], [1], [0, 0, 1, 1], [], []>} : vector<8x32xf32>, vector<32x128xf32>, vector<8x128xf32> -> vector<8x128xf32>
    %235 = arith.addf %233, %234 : vector<8x128xf32>
    %236 = arith.negf %235 : vector<8x128xf32>
    %237 = math.exp %236 : vector<8x128xf32>
    %cst_70 = arith.constant 1.000000e+00 : f32
    %238 = vector.broadcast %cst_70 : f32 to vector<8x128xf32>
    %239 = arith.addf %238, %237 : vector<8x128xf32>
    %240 = arith.divf %238, %239 : vector<8x128xf32>
    %241 = vector.extract_strided_slice %240 {offsets = [0, 0], sizes = [8, 32], strides = [1, 1]} : vector<8x128xf32> to vector<8x32xf32>
    %242 = vector.extract_strided_slice %240 {offsets = [0, 32], sizes = [8, 32], strides = [1, 1]} : vector<8x128xf32> to vector<8x32xf32>
    %243 = vector.extract_strided_slice %240 {offsets = [0, 64], sizes = [8, 32], strides = [1, 1]} : vector<8x128xf32> to vector<8x32xf32>
    %cst_71 = arith.constant 2.000000e+00 : f32
    %244 = vector.broadcast %cst_71 : f32 to vector<8x32xf32>
    %245 = arith.mulf %244, %243 : vector<8x32xf32>
    %cst_72 = arith.constant 1.000000e+00 : f32
    %246 = vector.broadcast %cst_72 : f32 to vector<8x32xf32>
    %247 = arith.subf %245, %246 : vector<8x32xf32>
    %248 = vector.extract_strided_slice %240 {offsets = [0, 96], sizes = [8, 32], strides = [1, 1]} : vector<8x128xf32> to vector<8x32xf32>
    %249 = arith.mulf %242, %229 : vector<8x32xf32>
    %250 = arith.mulf %241, %247 : vector<8x32xf32>
    %251 = arith.addf %249, %250 : vector<8x32xf32>
    %252 = math.tanh %251 : vector<8x32xf32>
    %253 = arith.mulf %248, %252 : vector<8x32xf32>
    %c8_73 = arith.constant 8 : index
    %c0_74 = arith.constant 0 : index
    %254 = vector.load %arg11[%c8_73, %c0_74] : memref<64x32xf32, #tpu.memory_space<vmem>>, vector<8x32xf32>
    tpu.vector_store %arg11[%c8_73, %c0_74], %253 {strides = array<i32>} : memref<64x32xf32, #tpu.memory_space<vmem>>, vector<8x32xf32>,
    %255 = vector.extract_strided_slice %206 {offsets = [16, 0], sizes = [8, 128], strides = [1, 1]} : vector<64x128xf32> to vector<8x128xf32>
    %cst_75 = arith.constant dense<0.000000e+00> : vector<8x128xf32>
    %256 = tpu.matmul %253, %208, %cst_75 {dimension_numbers = #tpu.dot_dimension_numbers<[1], [0], [0], [1], [0, 0, 1, 1], [], []>} : vector<8x32xf32>, vector<32x128xf32>, vector<8x128xf32> -> vector<8x128xf32>
    %257 = arith.addf %255, %256 : vector<8x128xf32>
    %258 = arith.negf %257 : vector<8x128xf32>
    %259 = math.exp %258 : vector<8x128xf32>
    %cst_76 = arith.constant 1.000000e+00 : f32
    %260 = vector.broadcast %cst_76 : f32 to vector<8x128xf32>
    %261 = arith.addf %260, %259 : vector<8x128xf32>
    %262 = arith.divf %260, %261 : vector<8x128xf32>
    %263 = vector.extract_strided_slice %262 {offsets = [0, 0], sizes = [8, 32], strides = [1, 1]} : vector<8x128xf32> to vector<8x32xf32>
    %264 = vector.extract_strided_slice %262 {offsets = [0, 32], sizes = [8, 32], strides = [1, 1]} : vector<8x128xf32> to vector<8x32xf32>
    %265 = vector.extract_strided_slice %262 {offsets = [0, 64], sizes = [8, 32], strides = [1, 1]} : vector<8x128xf32> to vector<8x32xf32>
    %cst_77 = arith.constant 2.000000e+00 : f32
    %266 = vector.broadcast %cst_77 : f32 to vector<8x32xf32>
    %267 = arith.mulf %266, %265 : vector<8x32xf32>
    %cst_78 = arith.constant 1.000000e+00 : f32
    %268 = vector.broadcast %cst_78 : f32 to vector<8x32xf32>
    %269 = arith.subf %267, %268 : vector<8x32xf32>
    %270 = vector.extract_strided_slice %262 {offsets = [0, 96], sizes = [8, 32], strides = [1, 1]} : vector<8x128xf32> to vector<8x32xf32>
    %271 = arith.mulf %264, %251 : vector<8x32xf32>
    %272 = arith.mulf %263, %269 : vector<8x32xf32>
    %273 = arith.addf %271, %272 : vector<8x32xf32>
    %274 = math.tanh %273 : vector<8x32xf32>
    %275 = arith.mulf %270, %274 : vector<8x32xf32>
    %c16_79 = arith.constant 16 : index
    %c0_80 = arith.constant 0 : index
    %276 = vector.load %arg11[%c16_79, %c0_80] : memref<64x32xf32, #tpu.memory_space<vmem>>, vector<8x32xf32>
    tpu.vector_store %arg11[%c16_79, %c0_80], %275 {strides = array<i32>} : memref<64x32xf32, #tpu.memory_space<vmem>>, vector<8x32xf32>,
    %277 = vector.extract_strided_slice %206 {offsets = [24, 0], sizes = [8, 128], strides = [1, 1]} : vector<64x128xf32> to vector<8x128xf32>
    %cst_81 = arith.constant dense<0.000000e+00> : vector<8x128xf32>
    %278 = tpu.matmul %275, %208, %cst_81 {dimension_numbers = #tpu.dot_dimension_numbers<[1], [0], [0], [1], [0, 0, 1, 1], [], []>} : vector<8x32xf32>, vector<32x128xf32>, vector<8x128xf32> -> vector<8x128xf32>
    %279 = arith.addf %277, %278 : vector<8x128xf32>
    %280 = arith.negf %279 : vector<8x128xf32>
    %281 = math.exp %280 : vector<8x128xf32>
    %cst_82 = arith.constant 1.000000e+00 : f32
    %282 = vector.broadcast %cst_82 : f32 to vector<8x128xf32>
    %283 = arith.addf %282, %281 : vector<8x128xf32>
    %284 = arith.divf %282, %283 : vector<8x128xf32>
    %285 = vector.extract_strided_slice %284 {offsets = [0, 0], sizes = [8, 32], strides = [1, 1]} : vector<8x128xf32> to vector<8x32xf32>
    %286 = vector.extract_strided_slice %284 {offsets = [0, 32], sizes = [8, 32], strides = [1, 1]} : vector<8x128xf32> to vector<8x32xf32>
    %287 = vector.extract_strided_slice %284 {offsets = [0, 64], sizes = [8, 32], strides = [1, 1]} : vector<8x128xf32> to vector<8x32xf32>
    %cst_83 = arith.constant 2.000000e+00 : f32
    %288 = vector.broadcast %cst_83 : f32 to vector<8x32xf32>
    %289 = arith.mulf %288, %287 : vector<8x32xf32>
    %cst_84 = arith.constant 1.000000e+00 : f32
    %290 = vector.broadcast %cst_84 : f32 to vector<8x32xf32>
    %291 = arith.subf %289, %290 : vector<8x32xf32>
    %292 = vector.extract_strided_slice %284 {offsets = [0, 96], sizes = [8, 32], strides = [1, 1]} : vector<8x128xf32> to vector<8x32xf32>
    %293 = arith.mulf %286, %273 : vector<8x32xf32>
    %294 = arith.mulf %285, %291 : vector<8x32xf32>
    %295 = arith.addf %293, %294 : vector<8x32xf32>
    %296 = math.tanh %295 : vector<8x32xf32>
    %297 = arith.mulf %292, %296 : vector<8x32xf32>
    %c24_85 = arith.constant 24 : index
    %c0_86 = arith.constant 0 : index
    %298 = vector.load %arg11[%c24_85, %c0_86] : memref<64x32xf32, #tpu.memory_space<vmem>>, vector<8x32xf32>
    tpu.vector_store %arg11[%c24_85, %c0_86], %297 {strides = array<i32>} : memref<64x32xf32, #tpu.memory_space<vmem>>, vector<8x32xf32>,
    %299 = vector.extract_strided_slice %206 {offsets = [32, 0], sizes = [8, 128], strides = [1, 1]} : vector<64x128xf32> to vector<8x128xf32>
    %cst_87 = arith.constant dense<0.000000e+00> : vector<8x128xf32>
    %300 = tpu.matmul %297, %208, %cst_87 {dimension_numbers = #tpu.dot_dimension_numbers<[1], [0], [0], [1], [0, 0, 1, 1], [], []>} : vector<8x32xf32>, vector<32x128xf32>, vector<8x128xf32> -> vector<8x128xf32>
    %301 = arith.addf %299, %300 : vector<8x128xf32>
    %302 = arith.negf %301 : vector<8x128xf32>
    %303 = math.exp %302 : vector<8x128xf32>
    %cst_88 = arith.constant 1.000000e+00 : f32
    %304 = vector.broadcast %cst_88 : f32 to vector<8x128xf32>
    %305 = arith.addf %304, %303 : vector<8x128xf32>
    %306 = arith.divf %304, %305 : vector<8x128xf32>
    %307 = vector.extract_strided_slice %306 {offsets = [0, 0], sizes = [8, 32], strides = [1, 1]} : vector<8x128xf32> to vector<8x32xf32>
    %308 = vector.extract_strided_slice %306 {offsets = [0, 32], sizes = [8, 32], strides = [1, 1]} : vector<8x128xf32> to vector<8x32xf32>
    %309 = vector.extract_strided_slice %306 {offsets = [0, 64], sizes = [8, 32], strides = [1, 1]} : vector<8x128xf32> to vector<8x32xf32>
    %cst_89 = arith.constant 2.000000e+00 : f32
    %310 = vector.broadcast %cst_89 : f32 to vector<8x32xf32>
    %311 = arith.mulf %310, %309 : vector<8x32xf32>
    %cst_90 = arith.constant 1.000000e+00 : f32
    %312 = vector.broadcast %cst_90 : f32 to vector<8x32xf32>
    %313 = arith.subf %311, %312 : vector<8x32xf32>
    %314 = vector.extract_strided_slice %306 {offsets = [0, 96], sizes = [8, 32], strides = [1, 1]} : vector<8x128xf32> to vector<8x32xf32>
    %315 = arith.mulf %308, %295 : vector<8x32xf32>
    %316 = arith.mulf %307, %313 : vector<8x32xf32>
    %317 = arith.addf %315, %316 : vector<8x32xf32>
    %318 = math.tanh %317 : vector<8x32xf32>
    %319 = arith.mulf %314, %318 : vector<8x32xf32>
    %c32_91 = arith.constant 32 : index
    %c0_92 = arith.constant 0 : index
    %320 = vector.load %arg11[%c32_91, %c0_92] : memref<64x32xf32, #tpu.memory_space<vmem>>, vector<8x32xf32>
    tpu.vector_store %arg11[%c32_91, %c0_92], %319 {strides = array<i32>} : memref<64x32xf32, #tpu.memory_space<vmem>>, vector<8x32xf32>,
    %321 = vector.extract_strided_slice %206 {offsets = [40, 0], sizes = [8, 128], strides = [1, 1]} : vector<64x128xf32> to vector<8x128xf32>
    %cst_93 = arith.constant dense<0.000000e+00> : vector<8x128xf32>
    %322 = tpu.matmul %319, %208, %cst_93 {dimension_numbers = #tpu.dot_dimension_numbers<[1], [0], [0], [1], [0, 0, 1, 1], [], []>} : vector<8x32xf32>, vector<32x128xf32>, vector<8x128xf32> -> vector<8x128xf32>
    %323 = arith.addf %321, %322 : vector<8x128xf32>
    %324 = arith.negf %323 : vector<8x128xf32>
    %325 = math.exp %324 : vector<8x128xf32>
    %cst_94 = arith.constant 1.000000e+00 : f32
    %326 = vector.broadcast %cst_94 : f32 to vector<8x128xf32>
    %327 = arith.addf %326, %325 : vector<8x128xf32>
    %328 = arith.divf %326, %327 : vector<8x128xf32>
    %329 = vector.extract_strided_slice %328 {offsets = [0, 0], sizes = [8, 32], strides = [1, 1]} : vector<8x128xf32> to vector<8x32xf32>
    %330 = vector.extract_strided_slice %328 {offsets = [0, 32], sizes = [8, 32], strides = [1, 1]} : vector<8x128xf32> to vector<8x32xf32>
    %331 = vector.extract_strided_slice %328 {offsets = [0, 64], sizes = [8, 32], strides = [1, 1]} : vector<8x128xf32> to vector<8x32xf32>
    %cst_95 = arith.constant 2.000000e+00 : f32
    %332 = vector.broadcast %cst_95 : f32 to vector<8x32xf32>
    %333 = arith.mulf %332, %331 : vector<8x32xf32>
    %cst_96 = arith.constant 1.000000e+00 : f32
    %334 = vector.broadcast %cst_96 : f32 to vector<8x32xf32>
    %335 = arith.subf %333, %334 : vector<8x32xf32>
    %336 = vector.extract_strided_slice %328 {offsets = [0, 96], sizes = [8, 32], strides = [1, 1]} : vector<8x128xf32> to vector<8x32xf32>
    %337 = arith.mulf %330, %317 : vector<8x32xf32>
    %338 = arith.mulf %329, %335 : vector<8x32xf32>
    %339 = arith.addf %337, %338 : vector<8x32xf32>
    %340 = math.tanh %339 : vector<8x32xf32>
    %341 = arith.mulf %336, %340 : vector<8x32xf32>
    %c40_97 = arith.constant 40 : index
    %c0_98 = arith.constant 0 : index
    %342 = vector.load %arg11[%c40_97, %c0_98] : memref<64x32xf32, #tpu.memory_space<vmem>>, vector<8x32xf32>
    tpu.vector_store %arg11[%c40_97, %c0_98], %341 {strides = array<i32>} : memref<64x32xf32, #tpu.memory_space<vmem>>, vector<8x32xf32>,
    %343 = vector.extract_strided_slice %206 {offsets = [48, 0], sizes = [8, 128], strides = [1, 1]} : vector<64x128xf32> to vector<8x128xf32>
    %cst_99 = arith.constant dense<0.000000e+00> : vector<8x128xf32>
    %344 = tpu.matmul %341, %208, %cst_99 {dimension_numbers = #tpu.dot_dimension_numbers<[1], [0], [0], [1], [0, 0, 1, 1], [], []>} : vector<8x32xf32>, vector<32x128xf32>, vector<8x128xf32> -> vector<8x128xf32>
    %345 = arith.addf %343, %344 : vector<8x128xf32>
    %346 = arith.negf %345 : vector<8x128xf32>
    %347 = math.exp %346 : vector<8x128xf32>
    %cst_100 = arith.constant 1.000000e+00 : f32
    %348 = vector.broadcast %cst_100 : f32 to vector<8x128xf32>
    %349 = arith.addf %348, %347 : vector<8x128xf32>
    %350 = arith.divf %348, %349 : vector<8x128xf32>
    %351 = vector.extract_strided_slice %350 {offsets = [0, 0], sizes = [8, 32], strides = [1, 1]} : vector<8x128xf32> to vector<8x32xf32>
    %352 = vector.extract_strided_slice %350 {offsets = [0, 32], sizes = [8, 32], strides = [1, 1]} : vector<8x128xf32> to vector<8x32xf32>
    %353 = vector.extract_strided_slice %350 {offsets = [0, 64], sizes = [8, 32], strides = [1, 1]} : vector<8x128xf32> to vector<8x32xf32>
    %cst_101 = arith.constant 2.000000e+00 : f32
    %354 = vector.broadcast %cst_101 : f32 to vector<8x32xf32>
    %355 = arith.mulf %354, %353 : vector<8x32xf32>
    %cst_102 = arith.constant 1.000000e+00 : f32
    %356 = vector.broadcast %cst_102 : f32 to vector<8x32xf32>
    %357 = arith.subf %355, %356 : vector<8x32xf32>
    %358 = vector.extract_strided_slice %350 {offsets = [0, 96], sizes = [8, 32], strides = [1, 1]} : vector<8x128xf32> to vector<8x32xf32>
    %359 = arith.mulf %352, %339 : vector<8x32xf32>
    %360 = arith.mulf %351, %357 : vector<8x32xf32>
    %361 = arith.addf %359, %360 : vector<8x32xf32>
    %362 = math.tanh %361 : vector<8x32xf32>
    %363 = arith.mulf %358, %362 : vector<8x32xf32>
    %c48_103 = arith.constant 48 : index
    %c0_104 = arith.constant 0 : index
    %364 = vector.load %arg11[%c48_103, %c0_104] : memref<64x32xf32, #tpu.memory_space<vmem>>, vector<8x32xf32>
    tpu.vector_store %arg11[%c48_103, %c0_104], %363 {strides = array<i32>} : memref<64x32xf32, #tpu.memory_space<vmem>>, vector<8x32xf32>,
    %365 = vector.extract_strided_slice %206 {offsets = [56, 0], sizes = [8, 128], strides = [1, 1]} : vector<64x128xf32> to vector<8x128xf32>
    %cst_105 = arith.constant dense<0.000000e+00> : vector<8x128xf32>
    %366 = tpu.matmul %363, %208, %cst_105 {dimension_numbers = #tpu.dot_dimension_numbers<[1], [0], [0], [1], [0, 0, 1, 1], [], []>} : vector<8x32xf32>, vector<32x128xf32>, vector<8x128xf32> -> vector<8x128xf32>
    %367 = arith.addf %365, %366 : vector<8x128xf32>
    %368 = arith.negf %367 : vector<8x128xf32>
    %369 = math.exp %368 : vector<8x128xf32>
    %cst_106 = arith.constant 1.000000e+00 : f32
    %370 = vector.broadcast %cst_106 : f32 to vector<8x128xf32>
    %371 = arith.addf %370, %369 : vector<8x128xf32>
    %372 = arith.divf %370, %371 : vector<8x128xf32>
    %373 = vector.extract_strided_slice %372 {offsets = [0, 0], sizes = [8, 32], strides = [1, 1]} : vector<8x128xf32> to vector<8x32xf32>
    %374 = vector.extract_strided_slice %372 {offsets = [0, 32], sizes = [8, 32], strides = [1, 1]} : vector<8x128xf32> to vector<8x32xf32>
    %375 = vector.extract_strided_slice %372 {offsets = [0, 64], sizes = [8, 32], strides = [1, 1]} : vector<8x128xf32> to vector<8x32xf32>
    %cst_107 = arith.constant 2.000000e+00 : f32
    %376 = vector.broadcast %cst_107 : f32 to vector<8x32xf32>
    %377 = arith.mulf %376, %375 : vector<8x32xf32>
    %cst_108 = arith.constant 1.000000e+00 : f32
    %378 = vector.broadcast %cst_108 : f32 to vector<8x32xf32>
    %379 = arith.subf %377, %378 : vector<8x32xf32>
    %380 = vector.extract_strided_slice %372 {offsets = [0, 96], sizes = [8, 32], strides = [1, 1]} : vector<8x128xf32> to vector<8x32xf32>
    %381 = arith.mulf %374, %361 : vector<8x32xf32>
    %382 = arith.mulf %373, %379 : vector<8x32xf32>
    %383 = arith.addf %381, %382 : vector<8x32xf32>
    %384 = math.tanh %383 : vector<8x32xf32>
    %385 = arith.mulf %380, %384 : vector<8x32xf32>
    %c56_109 = arith.constant 56 : index
    %c0_110 = arith.constant 0 : index
    %386 = vector.load %arg11[%c56_109, %c0_110] : memref<64x32xf32, #tpu.memory_space<vmem>>, vector<8x32xf32>
    tpu.vector_store %arg11[%c56_109, %c0_110], %385 {strides = array<i32>} : memref<64x32xf32, #tpu.memory_space<vmem>>, vector<8x32xf32>,
    %c0_111 = arith.constant 0 : index
    %c0_112 = arith.constant 0 : index
    %387 = vector.load %arg11[%c0_111, %c0_112] : memref<64x32xf32, #tpu.memory_space<vmem>>, vector<64x32xf32>
    %cst_113 = arith.constant 0.000000e+00 : f32
    %388 = vector.broadcast %cst_113 : f32 to vector<64x32xf32>
    %389 = arith.maximumf %387, %388 : vector<64x32xf32>
    %c0_114 = arith.constant 0 : index
    %c0_115 = arith.constant 0 : index
    %390 = vector.load %arg10[%c0_114, %c0_115] : memref<64x32xf32, #tpu.memory_space<vmem>>, vector<64x32xf32>
    tpu.vector_store %arg10[%c0_114, %c0_115], %389 {strides = array<i32>} : memref<64x32xf32, #tpu.memory_space<vmem>>, vector<64x32xf32>,
    %391 = vector.extract_strided_slice %389 {offsets = [56, 0], sizes = [8, 32], strides = [1, 1]} : vector<64x32xf32> to vector<8x32xf32>
    %c0_116 = arith.constant 0 : index
    %c0_117 = arith.constant 0 : index
    %392 = vector.load %arg7[%c0_116, %c0_117] : memref<32x4xf32, #tpu.memory_space<vmem>>, vector<32x4xf32>
    %cst_118 = arith.constant dense<0.000000e+00> : vector<8x4xf32>
    %393 = tpu.matmul %391, %392, %cst_118 {dimension_numbers = #tpu.dot_dimension_numbers<[1], [0], [0], [1], [0, 0, 1, 1], [], []>} : vector<8x32xf32>, vector<32x4xf32>, vector<8x4xf32> -> vector<8x4xf32>
    %c0_119 = arith.constant 0 : index
    %c0_120 = arith.constant 0 : index
    %394 = vector.load %arg8[%c0_119, %c0_120] : memref<1x4xf32, #tpu.memory_space<vmem>>, vector<1x4xf32>
    %395 = vector.broadcast %394 : vector<1x4xf32> to vector<8x4xf32>
    %396 = arith.addf %393, %395 : vector<8x4xf32>
    %c0_121 = arith.constant 0 : index
    %c0_122 = arith.constant 0 : index
    %397 = vector.load %arg9[%c0_121, %c0_122] : memref<8x4xf32, #tpu.memory_space<vmem>>, vector<8x4xf32>
    tpu.vector_store %arg9[%c0_121, %c0_122], %396 {strides = array<i32>} : memref<8x4xf32, #tpu.memory_space<vmem>>, vector<8x4xf32>,
    return
  }
}

</mosaic_0001>

<bundles_post_ra>
// kernel: lstm_main_forward.1
= control target key start
LH: loop header
LB: loop body
LE: loop exit
PB: predicated region body
PF: predicated region fallthrough
CT: control target
= control target key end

     0   :  { %v34_v0 = vlaneseq  ;;  %vm58_vm0 = vcmask 130048   ;;  %v1521_v7 = vmov 1.0   ;;  %v1522_v15 = vmov 0.0   ;;  %s1523_s27 = smov 64   ;;  %s1524_s28 = smov 32   ;;  %s1964_s1 = inlined_call_operand.vmem [shape: f32[16,128], index: 1, kind: input, shape index: {}]   ;;  %s1965_s0 = inlined_call_operand.vmem [shape: f32[64,16], index: 0, kind: input, shape index: {}]   ;;  %s1966_s2 = inlined_call_operand.vmem [shape: f32[32,128], index: 2, kind: input, shape index: {}]   ;;  %s1967_s3 = inlined_call_operand.vmem [shape: f32[1,128], index: 3, kind: input, shape index: {}]   ;;  %s1968_s4 = inlined_call_operand.vmem [shape: f32[32,128], index: 4, kind: input, shape index: {}]   ;;  %s1969_s6 = inlined_call_operand.vmem [shape: f32[1,128], index: 6, kind: input, shape index: {}]   ;;  %s1970_s5 = inlined_call_operand.vmem [shape: f32[32,128], index: 5, kind: input, shape index: {}]   ;;  %s1971_s10 = inlined_call_operand.vmem [shape: f32[64,32], index: 10, kind: output, shape index: {1}]   ;;  %s1972_s8 = inlined_call_operand.vmem [shape: f32[1,4], index: 8, kind: input, shape index: {}]   ;;  %s1973_s7 = inlined_call_operand.vmem [shape: f32[32,4], index: 7, kind: input, shape index: {}]   ;;  %s1974_s9 = inlined_call_operand.vmem [shape: f32[8,4], index: 9, kind: output, shape index: {0}]  }
   0x1   :  { %v49_v1 = vld [vmem:[%s1964_s1 + $0x8] sm:$0xff]  ;;  %v48_v2 = vld [vmem:[%s1964_s1] sm:$0xff]  ;;  %v53_v5 = vld [vmem:[%s1966_s2 + $0x18] sm:$0xff]  ;;  %vm136_vm8 = vcmask 261120  }
   0x2   :  { %97 = vmatpush.msra.mxu0 %v49_v1  ;;  %v35_v3 = vand.u32 127, %v34_v0  ;;  %v40_v4 = vld [vmem:[%s1965_s0] sm:$0xff]  ;;  %v52_v6 = vld [vmem:[%s1966_s2 + $0x10] sm:$0xff]  ;;  %v51_v9 = vld [vmem:[%s1966_s2 + $0x8] sm:$0xff] }
   0x3   :  { %v50_v12 = vld [vmem:[%s1966_s2] sm:$0xff]  ;;  %v677_v45 = vld [vmem:[%s1968_s4 + $0x18] sm:$0xff]  ;;  %v41_v46 = vld [vmem:[%s1965_s0 + $0x8] sm:$0xff] }
   0x4   :  { %vm36_vm1 = vcmp.ge.s32.totalorder %v35_v3, 64  ;;  %vm37_vm2 = vcmp.lt.s32.totalorder %v35_v3, 96  ;;  %98 = vmatpush.msra.mxu0 %v48_v2  ;;  %v1644_v16 = vld [vmem:[%s1967_s3] ss:$0 sm:$0xff]  ;;  %v676_v47 = vld [vmem:[%s1968_s4 + $0x10] sm:$0xff]  ;;  %722 = vmatpush.msra.mxu3 %v677_v45  ;;  %v675_v48 = vld [vmem:[%s1968_s4 + $0x8] sm:$0xff] }
   0x5   :  { %vm38_vm3 = vmand %vm36_vm1, %vm37_vm2  ;;  %1354 = vmatmul.msk.f32.vlgmr.msra.gmra.mxu0 %vm58_vm0, %v40_v4  ;;  %v674_v49 = vld [vmem:[%s1968_s4] sm:$0xff] }
   0x6   :  { %v1596_v8 = vsel %vm38_vm3, 2.0, %v1521_v7  ;;  %723 = vmatpush.msra.mxu3 %v676_v47 }
   0x7   :  { %v1602_v10 = vmul.f32 %v53_v5, %v1596_v8  ;;  %v1605_v11 = vmul.f32 %v52_v6, %v1596_v8  ;;  %v1612_v13 = vmul.f32 %v51_v9, %v1596_v8  ;;  %v1618_v14 = vmul.f32 %v50_v12, %v1596_v8 }
   0x8   :  { %724 = vmatpush.msra.mxu3 %v675_v48  ;;  %v43_v48 = vld [vmem:[%s1965_s0 + $0x18] sm:$0xff] }
   0x9   :  { %152 = vmatpush.msra.mxu1 %v1602_v10  ;;  %218 = vmatpush.msra.mxu2 %v1602_v10 }
   0xa   :  { %482 = vmatpush.msrb.mxu0 %v1602_v10  ;;  %725 = vmatpush.msra.mxu3 %v674_v49 }
   0xb   :  { %153 = vmatpush.msra.mxu1 %v1605_v11  ;;  %219 = vmatpush.msra.mxu2 %v1605_v11 }
   0xc   :  { %483 = vmatpush.msrb.mxu0 %v1605_v11 }
   0xd   :  { %154 = vmatpush.msra.mxu1 %v1612_v13  ;;  %220 = vmatpush.msra.mxu2 %v1612_v13 }
   0xe   :  { %484 = vmatpush.msrb.mxu0 %v1612_v13 }
   0xf   :  { %155 = vmatpush.msra.mxu1 %v1618_v14  ;;  %221 = vmatpush.msra.mxu2 %v1618_v14 }
  0x10   :  { %156 = vmatmul.f32.vlgmr.msra.gmra.mxu1 %v1522_v15  ;;  %485 = vmatpush.msrb.mxu0 %v1618_v14 }
  0x11   :  { %284 = vmatpush.msrb.mxu2 %v1602_v10  ;;  %350 = vmatpush.msrb.mxu1 %v1602_v10 }
  0x12   :  { %1355 = vmatmul.msk.f32.gmra.mxu0 %vm58_vm0, %v41_v46 }
  0x13   :  { %285 = vmatpush.msrb.mxu2 %v1605_v11  ;;  %351 = vmatpush.msrb.mxu1 %v1605_v11 }
  0x15   :  { %286 = vmatpush.msrb.mxu2 %v1612_v13  ;;  %352 = vmatpush.msrb.mxu1 %v1612_v13 }
  0x17   :  { %287 = vmatpush.msrb.mxu2 %v1618_v14  ;;  %353 = vmatpush.msrb.mxu1 %v1618_v14 }
  0x19   :  { %548 = vmatpush.msra.mxu1 %v1602_v10 }
  0x1b   :  { %549 = vmatpush.msra.mxu1 %v1605_v11 }
  0x1d   :  { %550 = vmatpush.msra.mxu1 %v1612_v13 }
  0x1f   :  { %551 = vmatpush.msra.mxu1 %v1618_v14 }
  0x82   :  { %v100_v17 = vpop.f32.mrf.mxu0 }
  0x83   :  { %v101_v18 = vadd.f32 %v1644_v16, %v100_v17 }
  0x85   :  { %v124_v19 = vmul.f32 %v101_v18, %v1596_v8 }
  0x8d   :  { %v157_v20 = vpop.f32.mrf.mxu1 }
  0x8e   :  { %v160_v21 = vadd.f32 %v157_v20, %v124_v19 }
  0x8f   :  { %v103_v52 = vpop.f32.mrf.mxu0 }
  0x90   :  { %v1362_v22 = vmul.f32 -1.442695, %v160_v21  ;;  %v104_v53 = vadd.f32 %v1644_v16, %v103_v52 }
  0x92   :  { %1424 = vpow2.f32 %v1362_v22  ;;  %v125_v54 = vmul.f32 %v104_v53, %v1596_v8 }
  0x98   :  { %v1425_v23 = vpop.eup %1424 }
  0x99   :  { %v164_v24 = vadd.f32 1.0, %v1425_v23  ;;  %v42_v23 = vld [vmem:[%s1965_s0 + $0x10] sm:$0xff] }
  0x9a   :  { %1356 = vmatmul.msk.f32.gmra.mxu0 %vm58_vm0, %v42_v23 }
  0x9b   :  { %1426 = vrcp.f32 %v164_v24  ;;  %v176_v28 = vand.u32 2147483648, %v164_v24  ;;  %v174_v30 = vand.u32 2147483647, %v164_v24  ;;  %vm170_vm5 = vweird.f32 %v164_v24 }
  0x9d   :  { %v177_v32 = vor.u32 1.1754944e-38, %v176_v28  ;;  %vm175_vm7 = vcmp.eq.f32.partialorder %v174_v30, 8.507059e+37 }
  0xa1   :  { %v1427_v25 = vpop.eup %1426 }
  0xa2   :  { %v166_v26 = vmul.f32 %v1427_v25, %v164_v24  ;;  %vm171_vm4 = vweird.f32 %v1427_v25  ;;  %1357 = vmatmul.msk.f32.gmra.mxu0 %vm58_vm0, %v43_v48 }
  0xa3   :  { %vm172_vm6 = vmor %vm170_vm5, %vm171_vm4 }
  0xa4   :  { %v167_v27 = vsub.f32 1.0, %v166_v26 }
  0xa6   :  { %v168_v29 = vmul.f32 %v1427_v25, %v167_v27 }
  0xa8   :  { %v169_v31 = vadd.f32 %v1427_v25, %v168_v29 }
  0xaa   :  { %v173_v33 = vsel %vm172_vm6, %v1427_v25, %v169_v31 }
  0xab   :  { %v178_v34 = vsel %vm175_vm7, %v177_v32, %v173_v33 }
  0xac   :  { %v180_v35 = vmul.f32 2.0, %v178_v34  ;;  %v182_v39 = vmul.f32 0.0, %v178_v34 }
  0xae   :  { %v1363_v36 = vadd.f32 -1.0, %v180_v35 }
  0xb0   :  { %184 = vrot.lane.b32.xlu0 %v1363_v36, %s1523_s27 }
 0x117   :  { %v106_v26 = vpop.f32.mrf.mxu0 }
 0x118   :  { %v107_v27 = vadd.f32 %v1644_v16, %v106_v26 }
 0x11a   :  { %v126_v28 = vmul.f32 %v107_v27, %v1596_v8 }
 0x11f   :  { %v109_v53 = vpop.f32.mrf.mxu0 }
 0x122   :  { %v185_v37 = vpop.permute.xlu0 %184 }
 0x123   :  { %v187_v38 = vmul.f32 %v185_v37, %v178_v34 }
 0x125   :  { %189 = vrot.lane.b32.xlu0 %v187_v38, %s1524_s28 }
 0x197   :  { %v190_v40 = vpop.permute.xlu0 %189 }
 0x198   :  { %v192_v41 = vadd.f32 %v190_v40, %v182_v39 }
 0x19a   :  { %1428 = vtanh.f32 %v192_v41 }
 0x1a0   :  { %v1429_v42 = vpop.eup %1428 }
 0x1a1   :  { %195 = vrot.lane.b32.xlu1 %v1429_v42, %s1523_s27 }
 0x213   :  { %v196_v43 = vpop.permute.xlu1 %195 }
 0x214   :  { %v198_v44 = vmul.f32 %v196_v43, %v178_v34 }
 0x216   :  { %200 = vrot.lane.b32.xlu1 %v198_v44, %s1524_s28 }
 0x288   :  { %v201_v50 = vpop.permute.xlu1 %200 }
 0x289   :  { %203 = vst.msk [vmem:[#allocation2] sm:$0xff] %vm136_vm8, %v201_v50  ;;  %1364 = vmatmul.msk.f32.vlgmr.msra.gmra.mxu2 %vm136_vm8, %v201_v50 }
 0x28a   :  { %416 = vmatpush.msra.mxu2 %v1602_v10 }
 0x28c   :  { %417 = vmatpush.msra.mxu2 %v1605_v11 }
 0x28e   :  { %418 = vmatpush.msra.mxu2 %v1612_v13 }
 0x290   :  { %v666_v51 = vld [vmem:[#allocation2] sm:$0xff]  ;;  %419 = vmatpush.msra.mxu2 %v1618_v14 }
 0x291   :  { %1385 = vmatmul.msk.f32.vlgmr.msra.gmra.mxu3 %vm136_vm8, %v666_v51 }
 0x30c   :  { %v223_v55 = vpop.f32.mrf.mxu2 }
 0x30d   :  { %v226_v56 = vadd.f32 %v223_v55, %v125_v54  ;;  %v110_v54 = vadd.f32 %v1644_v16, %v109_v53 }
 0x30f   :  { %v1365_v57 = vmul.f32 -1.442695, %v226_v56  ;;  %v127_v55 = vmul.f32 %v110_v54, %v1596_v8 }
 0x311   :  { %1430 = vpow2.f32 %v1365_v57 }
 0x317   :  { %v1431_v58 = vpop.eup %1430 }
 0x318   :  { %v230_v59 = vadd.f32 1.0, %v1431_v58 }
 0x31a   :  { %1432 = vrcp.f32 %v230_v59  ;;  %v242_v63 = vand.u32 2147483648, %v230_v59  ;;  %v240_v1 = vand.u32 2147483647, %v230_v59  ;;  %vm236_vm10 = vweird.f32 %v230_v59 }
 0x31c   :  { %v243_v3 = vor.u32 1.1754944e-38, %v242_v63  ;;  %vm241_vm12 = vcmp.eq.f32.partialorder %v240_v1, 8.507059e+37 }
 0x320   :  { %v1433_v60 = vpop.eup %1432 }
 0x321   :  { %v232_v61 = vmul.f32 %v1433_v60, %v230_v59  ;;  %vm237_vm9 = vweird.f32 %v1433_v60 }
 0x322   :  { %vm238_vm11 = vmor %vm236_vm10, %vm237_vm9 }
 0x323   :  { %v233_v62 = vsub.f32 1.0, %v232_v61 }
 0x325   :  { %v234_v0 = vmul.f32 %v1433_v60, %v233_v62 }
 0x327   :  { %v235_v2 = vadd.f32 %v1433_v60, %v234_v0 }
 0x329   :  { %v239_v4 = vsel %vm238_vm11, %v1433_v60, %v235_v2 }
 0x32a   :  { %v244_v5 = vsel %vm241_vm12, %v243_v3, %v239_v4 }
 0x32b   :  { %v246_v6 = vmul.f32 2.0, %v244_v5  ;;  %v248_v17 = vmul.f32 %v244_v5, %v192_v41 }
 0x32d   :  { %v1366_v7 = vadd.f32 -1.0, %v246_v6 }
 0x32f   :  { %250 = vrot.lane.b32.xlu2 %v1366_v7, %s1523_s27 }
 0x389   :  { %v251_v9 = vpop.permute.xlu2 %250 }
 0x38a   :  { %v253_v12 = vmul.f32 %v251_v9, %v244_v5 }
 0x38c   :  { %255 = vrot.lane.b32.xlu2 %v253_v12, %s1524_s28 }
 0x3e6   :  { %v256_v18 = vpop.permute.xlu2 %255 }
 0x3e7   :  { %v258_v19 = vadd.f32 %v256_v18, %v248_v17 }
 0x3e9   :  { %1434 = vtanh.f32 %v258_v19 }
 0x3ef   :  { %v1435_v20 = vpop.eup %1434 }
 0x3f0   :  { %261 = vrot.lane.b32.xlu0 %v1435_v20, %s1523_s27 }
 0x462   :  { %v262_v21 = vpop.permute.xlu0 %261 }
 0x463   :  { %v264_v22 = vmul.f32 %v262_v21, %v244_v5 }
 0x465   :  { %266 = vrot.lane.b32.xlu1 %v264_v22, %s1524_s28 }
 0x4d7   :  { %v267_v24 = vpop.permute.xlu1 %266 }
 0x4d8   :  { %269 = vst.msk [vmem:[#allocation2 + $0x8] sm:$0xff] %vm136_vm8, %v267_v24  ;;  %1367 = vmatmul.msk.f32.vlgmr.msrb.gmra.mxu2 %vm136_vm8, %v267_v24  ;;  %v44_v24 = vld [vmem:[%s1965_s0 + $0x20] sm:$0xff] }
 0x4d9   :  { %614 = vmatpush.msrb.mxu2 %v1602_v10  ;;  %1358 = vmatmul.msk.f32.gmra.mxu0 %vm58_vm0, %v44_v24 }
 0x4db   :  { %615 = vmatpush.msrb.mxu2 %v1605_v11 }
 0x4dd   :  { %616 = vmatpush.msrb.mxu2 %v1612_v13 }
 0x4df   :  { %v667_v25 = vld [vmem:[#allocation2 + $0x8] sm:$0xff]  ;;  %617 = vmatpush.msrb.mxu2 %v1618_v14 }
 0x4e0   :  { %1386 = vmatmul.msk.f32.gmra.mxu3 %vm136_vm8, %v667_v25 }
 0x556   :  { %v112_v27 = vpop.f32.mrf.mxu0 }
 0x55b   :  { %v289_v29 = vpop.f32.mrf.mxu2 }
 0x55c   :  { %v292_v30 = vadd.f32 %v289_v29, %v126_v28  ;;  %v113_v28 = vadd.f32 %v1644_v16, %v112_v27 }
 0x55e   :  { %v1368_v31 = vmul.f32 -1.442695, %v292_v30  ;;  %v128_v29 = vmul.f32 %v113_v28, %v1596_v8 }
 0x560   :  { %1436 = vpow2.f32 %v1368_v31 }
 0x566   :  { %v1437_v32 = vpop.eup %1436 }
 0x567   :  { %v296_v10 = vadd.f32 1.0, %v1437_v32 }
 0x569   :  { %1438 = vrcp.f32 %v296_v10  ;;  %v308_v34 = vand.u32 2147483648, %v296_v10  ;;  %v306_v14 = vand.u32 2147483647, %v296_v10  ;;  %vm302_vm14 = vweird.f32 %v296_v10 }
 0x56b   :  { %v309_v37 = vor.u32 1.1754944e-38, %v308_v34  ;;  %vm307_vm1 = vcmp.eq.f32.partialorder %v306_v14, 8.507059e+37 }
 0x56f   :  { %v1439_v11 = vpop.eup %1438 }
 0x570   :  { %v298_v33 = vmul.f32 %v1439_v11, %v296_v10  ;;  %vm303_vm13 = vweird.f32 %v1439_v11 }
 0x571   :  { %vm304_vm15 = vmor %vm302_vm14, %vm303_vm13 }
 0x572   :  { %v299_v13 = vsub.f32 1.0, %v298_v33 }
 0x574   :  { %v300_v35 = vmul.f32 %v1439_v11, %v299_v13 }
 0x576   :  { %v301_v36 = vadd.f32 %v1439_v11, %v300_v35 }
 0x578   :  { %v305_v38 = vsel %vm304_vm15, %v1439_v11, %v301_v36 }
 0x579   :  { %v310_v39 = vsel %vm307_vm1, %v309_v37, %v305_v38 }
 0x57a   :  { %v312_v40 = vmul.f32 2.0, %v310_v39  ;;  %v314_v44 = vmul.f32 %v310_v39, %v258_v19 }
 0x57c   :  { %v1369_v41 = vadd.f32 -1.0, %v312_v40 }
 0x57e   :  { %316 = vrot.lane.b32.xlu2 %v1369_v41, %s1523_s27 }
 0x5d8   :  { %v317_v42 = vpop.permute.xlu2 %316 }
 0x5d9   :  { %v319_v43 = vmul.f32 %v317_v42, %v310_v39 }
 0x5db   :  { %321 = vrot.lane.b32.xlu0 %v319_v43, %s1524_s28 }
 0x64d   :  { %v322_v45 = vpop.permute.xlu0 %321 }
 0x64e   :  { %v324_v46 = vadd.f32 %v322_v45, %v314_v44 }
 0x650   :  { %1440 = vtanh.f32 %v324_v46 }
 0x656   :  { %v1441_v47 = vpop.eup %1440 }
 0x657   :  { %327 = vrot.lane.b32.xlu1 %v1441_v47, %s1523_s27 }
 0x6c9   :  { %v328_v49 = vpop.permute.xlu1 %327 }
 0x6ca   :  { %v330_v50 = vmul.f32 %v328_v49, %v310_v39  ;;  %v45_v49 = vld [vmem:[%s1965_s0 + $0x28] sm:$0xff] }
 0x6cb   :  { %1359 = vmatmul.msk.f32.gmra.mxu0 %vm58_vm0, %v45_v49 }
 0x6cc   :  { %332 = vrot.lane.b32.xlu2 %v330_v50, %s1524_s28  ;;  %v46_v50 = vld [vmem:[%s1965_s0 + $0x30] sm:$0xff] }
 0x6d3   :  { %1360 = vmatmul.msk.f32.gmra.mxu0 %vm58_vm0, %v46_v50 }
 0x726   :  { %v333_v51 = vpop.permute.xlu2 %332 }
 0x727   :  { %335 = vst.msk [vmem:[#allocation2 + $0x10] sm:$0xff] %vm136_vm8, %v333_v51  ;;  %1370 = vmatmul.msk.f32.vlgmr.msrb.gmra.mxu1 %vm136_vm8, %v333_v51  ;;  %v47_v51 = vld [vmem:[%s1965_s0 + $0x38] sm:$0xff] }
 0x728   :  { %1361 = vmatmul.msk.f32.gmra.mxu0 %vm58_vm0, %v47_v51 }
 0x72e   :  { %v668_v52 = vld [vmem:[#allocation2 + $0x10] sm:$0xff] }
 0x72f   :  { %1387 = vmatmul.msk.f32.gmra.mxu3 %vm136_vm8, %v668_v52 }
 0x7a4   :  { %v355_v56 = vpop.f32.mrf.mxu1 }
 0x7a5   :  { %v358_v57 = vadd.f32 %v355_v56, %v127_v55  ;;  %v115_v56 = vpop.f32.mrf.mxu0 }
 0x7a7   :  { %v1371_v58 = vmul.f32 -1.442695, %v358_v57 }
 0x7a9   :  { %1442 = vpow2.f32 %v1371_v58 }
 0x7ad   :  { %v1739_v57 = vpop.f32.mrf.mxu0 }
 0x7af   :  { %v1443_v59 = vpop.eup %1442 }
 0x7b0   :  { %v362_v60 = vadd.f32 1.0, %v1443_v59  ;;  %v116_v59 = vadd.f32 %v1644_v16, %v115_v56 }
 0x7b2   :  { %1444 = vrcp.f32 %v362_v60  ;;  %v374_v0 = vand.u32 2147483648, %v362_v60  ;;  %v372_v2 = vand.u32 2147483647, %v362_v60  ;;  %vm368_vm3 = vweird.f32 %v362_v60 }
 0x7b4   :  { %v375_v4 = vor.u32 1.1754944e-38, %v374_v0  ;;  %vm373_vm5 = vcmp.eq.f32.partialorder %v372_v2, 8.507059e+37 }
 0x7b5   :  { %v1741_v58 = vpop.f32.mrf.mxu0 }
 0x7b8   :  { %v1445_v61 = vpop.eup %1444 }
 0x7b9   :  { %v364_v62 = vmul.f32 %v1445_v61, %v362_v60  ;;  %vm369_vm2 = vweird.f32 %v1445_v61  ;;  %v129_v60 = vmul.f32 %v116_v59, %v1596_v8 }
 0x7ba   :  { %vm370_vm4 = vmor %vm368_vm3, %vm369_vm2 }
 0x7bb   :  { %v365_v63 = vsub.f32 1.0, %v364_v62 }
 0x7bd   :  { %v366_v1 = vmul.f32 %v1445_v61, %v365_v63 }
 0x7bf   :  { %v367_v3 = vadd.f32 %v1445_v61, %v366_v1 }
 0x7c1   :  { %v371_v5 = vsel %vm370_vm4, %v1445_v61, %v367_v3 }
 0x7c2   :  { %v376_v6 = vsel %vm373_vm5, %v375_v4, %v371_v5 }
 0x7c3   :  { %v378_v7 = vmul.f32 2.0, %v376_v6  ;;  %v380_v18 = vmul.f32 %v376_v6, %v324_v46 }
 0x7c5   :  { %v1372_v9 = vadd.f32 -1.0, %v378_v7 }
 0x7c7   :  { %382 = vrot.lane.b32.xlu0 %v1372_v9, %s1523_s27 }
 0x839   :  { %v383_v12 = vpop.permute.xlu0 %382 }
 0x83a   :  { %v385_v17 = vmul.f32 %v383_v12, %v376_v6 }
 0x83c   :  { %387 = vrot.lane.b32.xlu1 %v385_v17, %s1524_s28 }
 0x8ae   :  { %v388_v19 = vpop.permute.xlu1 %387 }
 0x8af   :  { %v390_v20 = vadd.f32 %v388_v19, %v380_v18 }
 0x8b1   :  { %1446 = vtanh.f32 %v390_v20 }
 0x8b7   :  { %v1447_v21 = vpop.eup %1446 }
 0x8b8   :  { %393 = vrot.lane.b32.xlu2 %v1447_v21, %s1523_s27 }
 0x912   :  { %v394_v22 = vpop.permute.xlu2 %393 }
 0x913   :  { %v396_v23 = vmul.f32 %v394_v22, %v376_v6 }
 0x915   :  { %398 = vrot.lane.b32.xlu0 %v396_v23, %s1524_s28 }
 0x987   :  { %v399_v25 = vpop.permute.xlu0 %398 }
 0x988   :  { %401 = vst.msk [vmem:[#allocation2 + $0x18] sm:$0xff] %vm136_vm8, %v399_v25  ;;  %1373 = vmatmul.msk.f32.vlgmr.msra.gmra.mxu2 %vm136_vm8, %v399_v25 }
 0x98f   :  { %v669_v26 = vld [vmem:[#allocation2 + $0x18] sm:$0xff] }
 0x990   :  { %1388 = vmatmul.msk.f32.gmra.mxu3 %vm136_vm8, %v669_v26 }
 0xa0b   :  { %v421_v30 = vpop.f32.mrf.mxu2 }
 0xa0c   :  { %v424_v31 = vadd.f32 %v421_v30, %v128_v29  ;;  %v681_v29 = vld [vmem:[%s1970_s5 + $0x18] sm:$0xff] }
 0xa0d   :  { %v1756_v30 = vmul.f32 %v681_v29, %v1596_v8 }
 0xa0e   :  { %v1374_v32 = vmul.f32 -1.442695, %v424_v31  ;;  %v680_v31 = vld [vmem:[%s1970_s5 + $0x10] sm:$0xff] }
 0xa0f   :  { %775 = vmatpush.msrb.mxu1 %v1756_v30  ;;  %841 = vmatpush.msra.mxu2 %v1756_v30 }
 0xa10   :  { %1448 = vpow2.f32 %v1374_v32  ;;  %v679_v32 = vld [vmem:[%s1970_s5 + $0x8] sm:$0xff] }
 0xa16   :  { %v1449_v10 = vpop.eup %1448 }
 0xa17   :  { %v428_v11 = vadd.f32 1.0, %v1449_v10  ;;  %v678_v10 = vld [vmem:[%s1970_s5] sm:$0xff] }
 0xa19   :  { %1450 = vrcp.f32 %v428_v11  ;;  %v440_v35 = vand.u32 2147483648, %v428_v11  ;;  %v438_v36 = vand.u32 2147483647, %v428_v11  ;;  %vm434_vm7 = vweird.f32 %v428_v11 }
 0xa1b   :  { %v441_v38 = vor.u32 1.1754944e-38, %v440_v35  ;;  %vm439_vm10 = vcmp.eq.f32.partialorder %v438_v36, 8.507059e+37  ;;  %v1801_v36 = vld [vmem:[%s1969_s6] ss:$0 sm:$0xff] }
 0xa1f   :  { %v1451_v33 = vpop.eup %1450 }
 0xa20   :  { %v430_v13 = vmul.f32 %v1451_v33, %v428_v11  ;;  %vm435_vm6 = vweird.f32 %v1451_v33  ;;  %v1769_v11 = vmul.f32 %v680_v31, %v1596_v8 }
 0xa21   :  { %vm436_vm9 = vmor %vm434_vm7, %vm435_vm6 }
 0xa22   :  { %v431_v34 = vsub.f32 1.0, %v430_v13  ;;  %776 = vmatpush.msrb.mxu1 %v1769_v11  ;;  %v1777_v13 = vmul.f32 %v678_v10, %v1596_v8  ;;  %842 = vmatpush.msra.mxu2 %v1769_v11 }
 0xa24   :  { %v432_v14 = vmul.f32 %v1451_v33, %v431_v34 }
 0xa26   :  { %v433_v37 = vadd.f32 %v1451_v33, %v432_v14  ;;  %v119_v14 = vadd.f32 %v1644_v16, %v1739_v57 }
 0xa28   :  { %v437_v39 = vsel %vm436_vm9, %v1451_v33, %v433_v37  ;;  %v1772_v33 = vmul.f32 %v679_v32, %v1596_v8  ;;  %v130_v37 = vmul.f32 %v119_v14, %v1596_v8 }
 0xa29   :  { %v442_v40 = vsel %vm439_vm10, %v441_v38, %v437_v39  ;;  %v727_v38 = vpop.f32.mrf.mxu3 }
 0xa2a   :  { %v444_v41 = vmul.f32 2.0, %v442_v40  ;;  %v446_v45 = vmul.f32 %v442_v40, %v390_v20  ;;  %777 = vmatpush.msrb.mxu1 %v1772_v33  ;;  %843 = vmatpush.msra.mxu2 %v1772_v33 }
 0xa2c   :  { %v1375_v42 = vadd.f32 -1.0, %v444_v41  ;;  %778 = vmatpush.msrb.mxu1 %v1777_v13  ;;  %844 = vmatpush.msra.mxu2 %v1777_v13 }
 0xa2e   :  { %448 = vrot.lane.b32.xlu1 %v1375_v42, %s1523_s27 }
 0xaa0   :  { %v449_v43 = vpop.permute.xlu1 %448 }
 0xaa1   :  { %v451_v44 = vmul.f32 %v449_v43, %v442_v40 }
 0xaa3   :  { %453 = vrot.lane.b32.xlu2 %v451_v44, %s1524_s28 }
 0xafd   :  { %v454_v46 = vpop.permute.xlu2 %453 }
 0xafe   :  { %v456_v47 = vadd.f32 %v454_v46, %v446_v45 }
 0xb00   :  { %1452 = vtanh.f32 %v456_v47 }
 0xb06   :  { %v1453_v48 = vpop.eup %1452 }
 0xb07   :  { %459 = vrot.lane.b32.xlu0 %v1453_v48, %s1523_s27 }
 0xb79   :  { %v460_v52 = vpop.permute.xlu0 %459 }
 0xb7a   :  { %v462_v53 = vmul.f32 %v460_v52, %v442_v40  ;;  %v728_v40 = vadd.f32 %v1801_v36, %v727_v38 }
 0xb7c   :  { %464 = vrot.lane.b32.xlu1 %v462_v53, %s1524_s28  ;;  %v751_v42 = vmul.f32 %v728_v40, %v1596_v8 }
 0xbee   :  { %v465_v54 = vpop.permute.xlu1 %464 }
 0xbef   :  { %467 = vst.msk [vmem:[#allocation2 + $0x20] sm:$0xff] %vm136_vm8, %v465_v54  ;;  %1376 = vmatmul.msk.f32.vlgmr.msrb.gmra.mxu0 %vm136_vm8, %v465_v54 }
 0xbf6   :  { %v670_v55 = vld [vmem:[#allocation2 + $0x20] sm:$0xff] }
 0xbf7   :  { %1389 = vmatmul.msk.f32.gmra.mxu3 %vm136_vm8, %v670_v55 }
 0xc6c   :  { %v487_v61 = vpop.f32.mrf.mxu0 }
 0xc6d   :  { %v490_v62 = vadd.f32 %v487_v61, %v129_v60 }
 0xc6f   :  { %v1377_v63 = vmul.f32 -1.442695, %v490_v62 }
 0xc71   :  { %1454 = vpow2.f32 %v1377_v63 }
 0xc77   :  { %v1455_v0 = vpop.eup %1454 }
 0xc78   :  { %v494_v1 = vadd.f32 1.0, %v1455_v0 }
 0xc7a   :  { %1456 = vrcp.f32 %v494_v1  ;;  %v506_v5 = vand.u32 2147483648, %v494_v1  ;;  %v504_v7 = vand.u32 2147483647, %v494_v1  ;;  %vm500_vm11 = vweird.f32 %v494_v1 }
 0xc7c   :  { %v507_v12 = vor.u32 1.1754944e-38, %v506_v5  ;;  %vm505_vm13 = vcmp.eq.f32.partialorder %v504_v7, 8.507059e+37 }
 0xc80   :  { %v1457_v2 = vpop.eup %1456 }
 0xc81   :  { %v496_v3 = vmul.f32 %v1457_v2, %v494_v1  ;;  %vm501_vm0 = vweird.f32 %v1457_v2 }
 0xc82   :  { %vm502_vm12 = vmor %vm500_vm11, %vm501_vm0 }
 0xc83   :  { %v497_v4 = vsub.f32 1.0, %v496_v3 }
 0xc85   :  { %v498_v6 = vmul.f32 %v1457_v2, %v497_v4 }
 0xc87   :  { %v499_v9 = vadd.f32 %v1457_v2, %v498_v6 }
 0xc89   :  { %v503_v17 = vsel %vm502_vm12, %v1457_v2, %v499_v9 }
 0xc8a   :  { %v508_v18 = vsel %vm505_vm13, %v507_v12, %v503_v17 }
 0xc8b   :  { %v510_v19 = vmul.f32 2.0, %v508_v18  ;;  %v512_v23 = vmul.f32 %v508_v18, %v456_v47 }
 0xc8d   :  { %v1378_v20 = vadd.f32 -1.0, %v510_v19 }
 0xc8f   :  { %514 = vrot.lane.b32.xlu2 %v1378_v20, %s1523_s27 }
 0xce9   :  { %v515_v21 = vpop.permute.xlu2 %514 }
 0xcea   :  { %v517_v22 = vmul.f32 %v515_v21, %v508_v18 }
 0xcec   :  { %519 = vrot.lane.b32.xlu0 %v517_v22, %s1524_s28 }
 0xd5e   :  { %v520_v24 = vpop.permute.xlu0 %519 }
 0xd5f   :  { %v1747_v25 = vadd.f32 %v520_v24, %v512_v23 }
 0xd61   :  { %1458 = vtanh.f32 %v1747_v25 }
 0xd67   :  { %v1459_v26 = vpop.eup %1458 }
 0xd68   :  { %525 = vrot.lane.b32.xlu1 %v1459_v26, %s1523_s27 }
 0xdda   :  { %v526_v27 = vpop.permute.xlu1 %525 }
 0xddb   :  { %v528_v28 = vmul.f32 %v526_v27, %v508_v18 }
 0xddd   :  { %530 = vrot.lane.b32.xlu2 %v528_v28, %s1524_s28 }
 0xe37   :  { %v531_v34 = vpop.permute.xlu2 %530 }
 0xe38   :  { %533 = vst.msk [vmem:[#allocation2 + $0x28] sm:$0xff] %vm136_vm8, %v531_v34  ;;  %1379 = vmatmul.msk.f32.vlgmr.msra.gmra.mxu1 %vm136_vm8, %v531_v34 }
 0xe39   :  { %907 = vmatpush.msra.mxu1 %v1756_v30 }
 0xe3b   :  { %908 = vmatpush.msra.mxu1 %v1769_v11 }
 0xe3d   :  { %909 = vmatpush.msra.mxu1 %v1772_v33 }
 0xe3f   :  { %v671_v35 = vld [vmem:[#allocation2 + $0x28] sm:$0xff]  ;;  %910 = vmatpush.msra.mxu1 %v1777_v13 }
 0xe40   :  { %1390 = vmatmul.msk.f32.gmra.mxu3 %vm136_vm8, %v671_v35  ;;  %779 = vmatmul.f32.vlgmr.msrb.gmra.mxu1 %v1522_v15 }
 0xe41   :  { %1039 = vmatpush.msrb.mxu1 %v1756_v30 }
 0xe43   :  { %1040 = vmatpush.msrb.mxu1 %v1769_v11 }
 0xe45   :  { %1041 = vmatpush.msrb.mxu1 %v1772_v33 }
 0xe47   :  { %1042 = vmatpush.msrb.mxu1 %v1777_v13 }
 0xeb5   :  { %v553_v15 = vpop.f32.mrf.mxu1 }
 0xeb6   :  { %v556_v39 = vadd.f32 %v553_v15, %v130_v37  ;;  %v730_v15 = vpop.f32.mrf.mxu3 }
 0xeb7   :  { %v731_v40 = vadd.f32 %v1801_v36, %v730_v15 }
 0xeb8   :  { %v1380_v41 = vmul.f32 -1.442695, %v556_v39 }
 0xeba   :  { %1460 = vpow2.f32 %v1380_v41  ;;  %v752_v41 = vmul.f32 %v731_v40, %v1596_v8 }
 0xebd   :  { %v780_v43 = vpop.f32.mrf.mxu1 }
 0xebe   :  { %v783_v44 = vadd.f32 %v780_v43, %v751_v42 }
 0xec0   :  { %v1461_v45 = vpop.eup %1460  ;;  %v1393_v16 = vmul.f32 -1.442695, %v783_v44 }
 0xec1   :  { %v560_v46 = vadd.f32 1.0, %v1461_v45 }
 0xec2   :  { %1462 = vpow2.f32 %v1393_v16 }
 0xec3   :  { %1464 = vrcp.f32 %v560_v46  ;;  %v572_v52 = vand.u32 2147483648, %v560_v46  ;;  %v570_v54 = vand.u32 2147483647, %v560_v46  ;;  %vm566_vm15 = vweird.f32 %v560_v46 }
 0xec5   :  { %v573_v57 = vor.u32 1.1754944e-38, %v572_v52  ;;  %vm571_vm2 = vcmp.eq.f32.partialorder %v570_v54, 8.507059e+37 }
 0xec8   :  { %v1463_v47 = vpop.eup %1462 }
 0xec9   :  { %v1465_v48 = vpop.eup %1464  ;;  %v787_v49 = vadd.f32 1.0, %v1463_v47 }
 0xeca   :  { %v562_v50 = vmul.f32 %v1465_v48, %v560_v46  ;;  %vm567_vm14 = vweird.f32 %v1465_v48 }
 0xecb   :  { %1466 = vrcp.f32 %v787_v49  ;;  %vm568_vm1 = vmor %vm566_vm15, %vm567_vm14  ;;  %v799_v0 = vand.u32 2147483648, %v787_v49  ;;  %v797_v3 = vand.u32 2147483647, %v787_v49  ;;  %vm793_vm4 = vweird.f32 %v787_v49 }
 0xecc   :  { %v563_v51 = vsub.f32 1.0, %v562_v50 }
 0xecd   :  { %v800_v5 = vor.u32 1.1754944e-38, %v799_v0  ;;  %vm798_vm6 = vcmp.eq.f32.partialorder %v797_v3, 8.507059e+37 }
 0xece   :  { %v564_v53 = vmul.f32 %v1465_v48, %v563_v51 }
 0xed0   :  { %v565_v55 = vadd.f32 %v1465_v48, %v564_v53 }
 0xed1   :  { %v1467_v56 = vpop.eup %1466 }
 0xed2   :  { %v789_v59 = vmul.f32 %v1467_v56, %v787_v49  ;;  %v569_v60 = vsel %vm568_vm1, %v1465_v48, %v565_v55  ;;  %vm794_vm3 = vweird.f32 %v1467_v56 }
 0xed3   :  { %v574_v61 = vsel %vm571_vm2, %v573_v57, %v569_v60  ;;  %vm795_vm5 = vmor %vm793_vm4, %vm794_vm3 }
 0xed4   :  { %v790_v62 = vsub.f32 1.0, %v789_v59  ;;  %v576_v63 = vmul.f32 2.0, %v574_v61  ;;  %v578_v21 = vmul.f32 %v574_v61, %v1747_v25 }
 0xed6   :  { %v1381_v1 = vadd.f32 -1.0, %v576_v63  ;;  %v791_v2 = vmul.f32 %v1467_v56, %v790_v62 }
 0xed8   :  { %580 = vrot.lane.b32.xlu0 %v1381_v1, %s1523_s27  ;;  %v792_v4 = vadd.f32 %v1467_v56, %v791_v2 }
 0xeda   :  { %v796_v6 = vsel %vm795_vm5, %v1467_v56, %v792_v4 }
 0xedb   :  { %v801_v7 = vsel %vm798_vm6, %v800_v5, %v796_v6  ;;  %v733_v6 = vpop.f32.mrf.mxu3 }
 0xedc   :  { %v803_v9 = vmul.f32 2.0, %v801_v7  ;;  %v805_v26 = vmul.f32 0.0, %v801_v7 }
 0xede   :  { %v1394_v12 = vadd.f32 -1.0, %v803_v9 }
 0xee0   :  { %807 = vrot.lane.b32.xlu1 %v1394_v12, %s1523_s27 }
 0xf4a   :  { %v581_v17 = vpop.permute.xlu0 %580 }
 0xf4b   :  { %v583_v18 = vmul.f32 %v581_v17, %v574_v61 }
 0xf4d   :  { %585 = vrot.lane.b32.xlu2 %v583_v18, %s1524_s28 }
 0xf52   :  { %v808_v19 = vpop.permute.xlu1 %807 }
 0xf53   :  { %v810_v20 = vmul.f32 %v808_v19, %v801_v7 }
 0xf55   :  { %812 = vrot.lane.b32.xlu0 %v810_v20, %s1524_s28 }
 0xfa7   :  { %v586_v22 = vpop.permute.xlu2 %585 }
 0xfa8   :  { %v1811_v23 = vadd.f32 %v586_v22, %v578_v21 }
 0xfaa   :  { %1468 = vtanh.f32 %v1811_v23 }
 0xfb0   :  { %v1469_v24 = vpop.eup %1468 }
 0xfb1   :  { %591 = vrot.lane.b32.xlu1 %v1469_v24, %s1523_s27 }
 0xfc7   :  { %v813_v27 = vpop.permute.xlu0 %812 }
 0xfc8   :  { %v815_v28 = vadd.f32 %v813_v27, %v805_v26 }
 0xfca   :  { %1470 = vtanh.f32 %v815_v28 }
 0xfd0   :  { %v1471_v29 = vpop.eup %1470 }
 0xfd1   :  { %818 = vrot.lane.b32.xlu2 %v1471_v29, %s1523_s27 }
0x1023   :  { %v592_v31 = vpop.permute.xlu1 %591 }
0x1024   :  { %v594_v32 = vmul.f32 %v592_v31, %v574_v61 }
0x1026   :  { %596 = vrot.lane.b32.xlu0 %v594_v32, %s1524_s28 }
0x102b   :  { %v819_v25 = vpop.permute.xlu2 %818 }
0x102c   :  { %v821_v10 = vmul.f32 %v819_v25, %v801_v7  ;;  %v734_v7 = vadd.f32 %v1801_v36, %v733_v6 }
0x102e   :  { %823 = vrot.lane.b32.xlu1 %v821_v10, %s1524_s28  ;;  %v753_v9 = vmul.f32 %v734_v7, %v1596_v8 }
0x1098   :  { %v597_v34 = vpop.permute.xlu0 %596 }
0x1099   :  { %599 = vst.msk [vmem:[#allocation2 + $0x30] sm:$0xff] %vm136_vm8, %v597_v34  ;;  %1382 = vmatmul.msk.f32.vlgmr.msrb.gmra.mxu2 %vm136_vm8, %v597_v34 }
0x109a   :  { %973 = vmatpush.msrb.mxu2 %v1756_v30 }
0x109c   :  { %974 = vmatpush.msrb.mxu2 %v1769_v11 }
0x109e   :  { %975 = vmatpush.msrb.mxu2 %v1772_v33 }
0x10a0   :  { %v824_v35 = vpop.permute.xlu1 %823  ;;  %v672_v14 = vld [vmem:[#allocation2 + $0x30] sm:$0xff]  ;;  %976 = vmatpush.msrb.mxu2 %v1777_v13 }
0x10a1   :  { %826 = vst.msk [vmem:[#allocation2] sm:$0xff] %vm136_vm8, %v824_v35  ;;  %1391 = vmatmul.msk.f32.gmra.mxu3 %vm136_vm8, %v672_v14  ;;  %1395 = vmatmul.msk.f32.vlgmr.msra.gmra.mxu2 %vm136_vm8, %v824_v35 }
0x10a2   :  { %1105 = vmatpush.msra.mxu2 %v1756_v30 }
0x10a4   :  { %1106 = vmatpush.msra.mxu2 %v1769_v11 }
0x10a6   :  { %1107 = vmatpush.msra.mxu2 %v1772_v33 }
0x10a8   :  { %v1289_v37 = vld [vmem:[#allocation2] sm:$0xff]  ;;  %1108 = vmatpush.msra.mxu2 %v1777_v13 }
0x10a9   :  { %v1297_v38 = vmax.f32 %v1289_v37, 0.0 }
0x10ab   :  { %1305 = vst.msk [vmem:[%s1971_s10] sm:$0xff] %vm136_vm8, %v1297_v38 }
0x111c   :  { %v1835_v39 = vpop.f32.mrf.mxu2 }
0x1124   :  { %v846_v42 = vpop.f32.mrf.mxu2 }
0x1125   :  { %v849_v43 = vadd.f32 %v846_v42, %v752_v41 }
0x1127   :  { %v1396_v44 = vmul.f32 -1.442695, %v849_v43 }
0x1129   :  { %1472 = vpow2.f32 %v1396_v44 }
0x112f   :  { %v1473_v45 = vpop.eup %1472 }
0x1130   :  { %v853_v16 = vadd.f32 1.0, %v1473_v45 }
0x1132   :  { %1474 = vrcp.f32 %v853_v16  ;;  %v865_v49 = vand.u32 2147483648, %v853_v16  ;;  %v863_v51 = vand.u32 2147483647, %v853_v16  ;;  %vm859_vm9 = vweird.f32 %v853_v16 }
0x1134   :  { %v866_v53 = vor.u32 1.1754944e-38, %v865_v49  ;;  %vm864_vm0 = vcmp.eq.f32.partialorder %v863_v51, 8.507059e+37 }
0x1138   :  { %v1475_v46 = vpop.eup %1474 }
0x1139   :  { %v855_v47 = vmul.f32 %v1475_v46, %v853_v16  ;;  %vm860_vm7 = vweird.f32 %v1475_v46  ;;  %v736_v16 = vpop.f32.mrf.mxu3 }
0x113a   :  { %vm861_vm10 = vmor %vm859_vm9, %vm860_vm7 }
0x113b   :  { %v856_v48 = vsub.f32 1.0, %v855_v47 }
0x113d   :  { %v857_v50 = vmul.f32 %v1475_v46, %v856_v48 }
0x113f   :  { %v858_v52 = vadd.f32 %v1475_v46, %v857_v50 }
0x1141   :  { %v862_v54 = vsel %vm861_vm10, %v1475_v46, %v858_v52  ;;  %v737_v46 = vadd.f32 %v1801_v36, %v736_v16 }
0x1142   :  { %v867_v55 = vsel %vm864_vm0, %v866_v53, %v862_v54 }
0x1143   :  { %v869_v56 = vmul.f32 2.0, %v867_v55  ;;  %v871_v61 = vmul.f32 %v867_v55, %v815_v28  ;;  %v754_v47 = vmul.f32 %v737_v46, %v1596_v8 }
0x1145   :  { %v1397_v57 = vadd.f32 -1.0, %v869_v56 }
0x1147   :  { %873 = vrot.lane.b32.xlu2 %v1397_v57, %s1523_s27 }
0x11a1   :  { %v874_v59 = vpop.permute.xlu2 %873 }
0x11a2   :  { %v876_v60 = vmul.f32 %v874_v59, %v867_v55 }
0x11a4   :  { %878 = vrot.lane.b32.xlu0 %v876_v60, %s1524_s28 }
0x1216   :  { %v879_v62 = vpop.permute.xlu0 %878 }
0x1217   :  { %v881_v63 = vadd.f32 %v879_v62, %v871_v61 }
0x1219   :  { %1476 = vtanh.f32 %v881_v63 }
0x121f   :  { %v1477_v0 = vpop.eup %1476 }
0x1220   :  { %884 = vrot.lane.b32.xlu1 %v1477_v0, %s1523_s27 }
0x1292   :  { %v885_v1 = vpop.permute.xlu1 %884 }
0x1293   :  { %v887_v2 = vmul.f32 %v885_v1, %v867_v55 }
0x1295   :  { %889 = vrot.lane.b32.xlu2 %v887_v2, %s1524_s28 }
0x12ef   :  { %v890_v3 = vpop.permute.xlu2 %889 }
0x12f0   :  { %892 = vst.msk [vmem:[#allocation2 + $0x8] sm:$0xff] %vm136_vm8, %v890_v3  ;;  %1398 = vmatmul.msk.f32.vlgmr.msra.gmra.mxu1 %vm136_vm8, %v890_v3 }
0x12f1   :  { %1171 = vmatpush.msra.mxu1 %v1756_v30 }
0x12f3   :  { %1172 = vmatpush.msra.mxu1 %v1769_v11 }
0x12f5   :  { %1173 = vmatpush.msra.mxu1 %v1772_v33 }
0x12f7   :  { %v1290_v4 = vld [vmem:[#allocation2 + $0x8] sm:$0xff]  ;;  %1174 = vmatpush.msra.mxu1 %v1777_v13 }
0x12f8   :  { %v1298_v5 = vmax.f32 %v1290_v4, 0.0 }
0x12fa   :  { %1306 = vst.msk [vmem:[%s1971_s10 + $0x8] sm:$0xff] %vm136_vm8, %v1298_v5 }
0x136d   :  { %v912_v12 = vpop.f32.mrf.mxu1 }
0x136e   :  { %v915_v17 = vadd.f32 %v912_v12, %v753_v9  ;;  %v739_v12 = vpop.f32.mrf.mxu3 }
0x1370   :  { %v1399_v18 = vmul.f32 -1.442695, %v915_v17  ;;  %v740_v17 = vadd.f32 %v1801_v36, %v739_v12 }
0x1372   :  { %1478 = vpow2.f32 %v1399_v18  ;;  %v755_v18 = vmul.f32 %v740_v17, %v1596_v8 }
0x1378   :  { %v1479_v19 = vpop.eup %1478 }
0x1379   :  { %v919_v20 = vadd.f32 1.0, %v1479_v19 }
0x137b   :  { %1480 = vrcp.f32 %v919_v20  ;;  %v931_v26 = vand.u32 2147483648, %v919_v20  ;;  %v929_v28 = vand.u32 2147483647, %v919_v20  ;;  %vm925_vm12 = vweird.f32 %v919_v20 }
0x137d   :  { %v932_v31 = vor.u32 1.1754944e-38, %v931_v26  ;;  %vm930_vm14 = vcmp.eq.f32.partialorder %v929_v28, 8.507059e+37 }
0x1381   :  { %v1481_v21 = vpop.eup %1480 }
0x1382   :  { %v921_v22 = vmul.f32 %v1481_v21, %v919_v20  ;;  %vm926_vm11 = vweird.f32 %v1481_v21 }
0x1383   :  { %vm927_vm13 = vmor %vm925_vm12, %vm926_vm11 }
0x1384   :  { %v922_v24 = vsub.f32 1.0, %v921_v22 }
0x1386   :  { %v923_v27 = vmul.f32 %v1481_v21, %v922_v24 }
0x1388   :  { %v924_v29 = vadd.f32 %v1481_v21, %v923_v27 }
0x138a   :  { %v928_v32 = vsel %vm927_vm13, %v1481_v21, %v924_v29 }
0x138b   :  { %v933_v25 = vsel %vm930_vm14, %v932_v31, %v928_v32 }
0x138c   :  { %v935_v10 = vmul.f32 2.0, %v933_v25  ;;  %v937_v37 = vmul.f32 %v933_v25, %v881_v63 }
0x138e   :  { %v1400_v34 = vadd.f32 -1.0, %v935_v10 }
0x1390   :  { %939 = vrot.lane.b32.xlu0 %v1400_v34, %s1523_s27 }
0x1402   :  { %v940_v35 = vpop.permute.xlu0 %939 }
0x1403   :  { %v942_v14 = vmul.f32 %v940_v35, %v933_v25 }
0x1405   :  { %944 = vrot.lane.b32.xlu1 %v942_v14, %s1524_s28 }
0x1477   :  { %v945_v38 = vpop.permute.xlu1 %944 }
0x1478   :  { %v947_v15 = vadd.f32 %v945_v38, %v937_v37 }
0x147a   :  { %1482 = vtanh.f32 %v947_v15 }
0x1480   :  { %v1483_v40 = vpop.eup %1482 }
0x1481   :  { %950 = vrot.lane.b32.xlu2 %v1483_v40, %s1523_s27 }
0x14db   :  { %v951_v41 = vpop.permute.xlu2 %950 }
0x14dc   :  { %v953_v42 = vmul.f32 %v951_v41, %v933_v25 }
0x14de   :  { %955 = vrot.lane.b32.xlu0 %v953_v42, %s1524_s28 }
0x1550   :  { %v956_v43 = vpop.permute.xlu0 %955 }
0x1551   :  { %958 = vst.msk [vmem:[#allocation2 + $0x10] sm:$0xff] %vm136_vm8, %v956_v43  ;;  %1401 = vmatmul.msk.f32.vlgmr.msrb.gmra.mxu2 %vm136_vm8, %v956_v43 }
0x1552   :  { %1237 = vmatpush.msrb.mxu2 %v1756_v30 }
0x1554   :  { %1238 = vmatpush.msrb.mxu2 %v1769_v11 }
0x1556   :  { %1239 = vmatpush.msrb.mxu2 %v1772_v33 }
0x1558   :  { %v1291_v44 = vld [vmem:[#allocation2 + $0x10] sm:$0xff]  ;;  %1240 = vmatpush.msrb.mxu2 %v1777_v13 }
0x1559   :  { %v1299_v45 = vmax.f32 %v1291_v44, 0.0 }
0x155b   :  { %1307 = vst.msk [vmem:[%s1971_s10 + $0x10] sm:$0xff] %vm136_vm8, %v1299_v45 }
0x15d4   :  { %v978_v48 = vpop.f32.mrf.mxu2 }
0x15d5   :  { %v981_v30 = vadd.f32 %v978_v48, %v754_v47  ;;  %v742_v48 = vpop.f32.mrf.mxu3 }
0x15d7   :  { %v1402_v49 = vmul.f32 -1.442695, %v981_v30  ;;  %v743_v30 = vadd.f32 %v1801_v36, %v742_v48 }
0x15d9   :  { %1484 = vpow2.f32 %v1402_v49  ;;  %v756_v49 = vmul.f32 %v743_v30, %v1596_v8 }
0x15df   :  { %v1485_v11 = vpop.eup %1484 }
0x15e0   :  { %v985_v33 = vadd.f32 1.0, %v1485_v11 }
0x15e2   :  { %1486 = vrcp.f32 %v985_v33  ;;  %v997_v52 = vand.u32 2147483648, %v985_v33  ;;  %v995_v54 = vand.u32 2147483647, %v985_v33  ;;  %vm991_vm1 = vweird.f32 %v985_v33 }
0x15e4   :  { %v998_v56 = vor.u32 1.1754944e-38, %v997_v52  ;;  %vm996_vm3 = vcmp.eq.f32.partialorder %v995_v54, 8.507059e+37 }
0x15e8   :  { %v1487_v50 = vpop.eup %1486 }
0x15e9   :  { %v987_v13 = vmul.f32 %v1487_v50, %v985_v33  ;;  %vm992_vm15 = vweird.f32 %v1487_v50 }
0x15ea   :  { %vm993_vm2 = vmor %vm991_vm1, %vm992_vm15 }
0x15eb   :  { %v988_v51 = vsub.f32 1.0, %v987_v13 }
0x15ed   :  { %v989_v53 = vmul.f32 %v1487_v50, %v988_v51 }
0x15ef   :  { %v990_v55 = vadd.f32 %v1487_v50, %v989_v53 }
0x15f1   :  { %v994_v57 = vsel %vm993_vm2, %v1487_v50, %v990_v55 }
0x15f2   :  { %v999_v59 = vsel %vm996_vm3, %v998_v56, %v994_v57 }
0x15f3   :  { %v1001_v60 = vmul.f32 2.0, %v999_v59  ;;  %v1003_v0 = vmul.f32 %v999_v59, %v947_v15 }
0x15f5   :  { %v1403_v61 = vadd.f32 -1.0, %v1001_v60 }
0x15f7   :  { %1005 = vrot.lane.b32.xlu1 %v1403_v61, %s1523_s27 }
0x1669   :  { %v1006_v62 = vpop.permute.xlu1 %1005 }
0x166a   :  { %v1008_v63 = vmul.f32 %v1006_v62, %v999_v59 }
0x166c   :  { %1010 = vrot.lane.b32.xlu2 %v1008_v63, %s1524_s28 }
0x16c6   :  { %v1011_v1 = vpop.permute.xlu2 %1010 }
0x16c7   :  { %v1013_v2 = vadd.f32 %v1011_v1, %v1003_v0  ;;  %v1520_v1 = vld [vmem:[%s1967_s3] ss:$0 sm:$0xff] }
0x16c9   :  { %1488 = vtanh.f32 %v1013_v2 }
0x16cf   :  { %v1489_v3 = vpop.eup %1488 }
0x16d0   :  { %1016 = vrot.lane.b32.xlu0 %v1489_v3, %s1523_s27 }
0x1742   :  { %v1017_v4 = vpop.permute.xlu0 %1016 }
0x1743   :  { %v1019_v5 = vmul.f32 %v1017_v4, %v999_v59 }
0x1745   :  { %1021 = vrot.lane.b32.xlu1 %v1019_v5, %s1524_s28 }
0x17b7   :  { %v1022_v6 = vpop.permute.xlu1 %1021 }
0x17b8   :  { %1024 = vst.msk [vmem:[#allocation2 + $0x18] sm:$0xff] %vm136_vm8, %v1022_v6  ;;  %1404 = vmatmul.msk.f32.vlgmr.msrb.gmra.mxu1 %vm136_vm8, %v1022_v6 }
0x17bf   :  { %v1292_v7 = vld [vmem:[#allocation2 + $0x18] sm:$0xff] }
0x17c0   :  { %v1300_v9 = vmax.f32 %v1292_v7, 0.0 }
0x17c2   :  { %1308 = vst.msk [vmem:[%s1971_s10 + $0x18] sm:$0xff] %vm136_vm8, %v1300_v9 }
0x1835   :  { %v1044_v19 = vpop.f32.mrf.mxu1 }
0x1836   :  { %v1047_v20 = vadd.f32 %v1044_v19, %v755_v18 }
0x1838   :  { %v1405_v21 = vmul.f32 -1.442695, %v1047_v20 }
0x183a   :  { %1490 = vpow2.f32 %v1405_v21 }
0x1840   :  { %v1491_v22 = vpop.eup %1490 }
0x1841   :  { %v1051_v24 = vadd.f32 1.0, %v1491_v22 }
0x1843   :  { %1492 = vrcp.f32 %v1051_v24  ;;  %v1063_v29 = vand.u32 2147483648, %v1051_v24  ;;  %v1061_v32 = vand.u32 2147483647, %v1051_v24  ;;  %vm1057_vm5 = vweird.f32 %v1051_v24 }
0x1845   :  { %v1064_v10 = vor.u32 1.1754944e-38, %v1063_v29  ;;  %vm1062_vm7 = vcmp.eq.f32.partialorder %v1061_v32, 8.507059e+37 }
0x1849   :  { %v1493_v26 = vpop.eup %1492 }
0x184a   :  { %v1053_v27 = vmul.f32 %v1493_v26, %v1051_v24  ;;  %vm1058_vm4 = vweird.f32 %v1493_v26 }
0x184b   :  { %vm1059_vm6 = vmor %vm1057_vm5, %vm1058_vm4 }
0x184c   :  { %v1054_v28 = vsub.f32 1.0, %v1053_v27 }
0x184e   :  { %v1055_v31 = vmul.f32 %v1493_v26, %v1054_v28 }
0x1850   :  { %v1056_v25 = vadd.f32 %v1493_v26, %v1055_v31 }
0x1852   :  { %v1060_v34 = vsel %vm1059_vm6, %v1493_v26, %v1056_v25 }
0x1853   :  { %v1065_v35 = vsel %vm1062_vm7, %v1064_v10, %v1060_v34 }
0x1854   :  { %v1067_v14 = vmul.f32 2.0, %v1065_v35  ;;  %v1069_v40 = vmul.f32 %v1065_v35, %v1013_v2  ;;  %v122_v2 = vadd.f32 %v1520_v1, %v1741_v58 }
0x1856   :  { %v1406_v37 = vadd.f32 -1.0, %v1067_v14  ;;  %v131_v3 = vmul.f32 %v122_v2, %v1596_v8 }
0x1858   :  { %1071 = vrot.lane.b32.xlu2 %v1406_v37, %s1523_s27  ;;  %v622_v4 = vadd.f32 %v1835_v39, %v131_v3 }
0x185a   :  { %v1383_v5 = vmul.f32 -1.442695, %v622_v4 }
0x18b2   :  { %v1072_v38 = vpop.permute.xlu2 %1071 }
0x18b3   :  { %v1074_v15 = vmul.f32 %v1072_v38, %v1065_v35 }
0x18b5   :  { %1076 = vrot.lane.b32.xlu0 %v1074_v15, %s1524_s28 }
0x1927   :  { %v1077_v41 = vpop.permute.xlu0 %1076 }
0x1928   :  { %v1885_v42 = vadd.f32 %v1077_v41, %v1069_v40  ;;  %v745_v40 = vpop.f32.mrf.mxu3 }
0x1929   :  { %v746_v41 = vadd.f32 %v1801_v36, %v745_v40 }
0x192a   :  { %1494 = vtanh.f32 %v1885_v42 }
0x1930   :  { %v1495_v43 = vpop.eup %1494 }
0x1931   :  { %1082 = vrot.lane.b32.xlu1 %v1495_v43, %s1523_s27 }
0x19a3   :  { %v1083_v44 = vpop.permute.xlu1 %1082 }
0x19a4   :  { %v1085_v45 = vmul.f32 %v1083_v44, %v1065_v35 }
0x19a6   :  { %1087 = vrot.lane.b32.xlu2 %v1085_v45, %s1524_s28 }
0x1a00   :  { %v1088_v16 = vpop.permute.xlu2 %1087 }
0x1a01   :  { %1090 = vst.msk [vmem:[#allocation2 + $0x20] sm:$0xff] %vm136_vm8, %v1088_v16  ;;  %1407 = vmatmul.msk.f32.vlgmr.msra.gmra.mxu2 %vm136_vm8, %v1088_v16 }
0x1a08   :  { %v1293_v46 = vld [vmem:[#allocation2 + $0x20] sm:$0xff] }
0x1a09   :  { %v1301_v47 = vmax.f32 %v1293_v46, 0.0 }
0x1a0b   :  { %1309 = vst.msk [vmem:[%s1971_s10 + $0x20] sm:$0xff] %vm136_vm8, %v1301_v47 }
0x1a84   :  { %v1110_v11 = vpop.f32.mrf.mxu2 }
0x1a85   :  { %v1113_v33 = vadd.f32 %v1110_v11, %v756_v49 }
0x1a87   :  { %v1408_v50 = vmul.f32 -1.442695, %v1113_v33 }
0x1a89   :  { %1496 = vpow2.f32 %v1408_v50 }
0x1a8f   :  { %v1497_v13 = vpop.eup %1496 }
0x1a90   :  { %v1117_v51 = vadd.f32 1.0, %v1497_v13 }
0x1a92   :  { %1498 = vrcp.f32 %v1117_v51  ;;  %v1129_v55 = vand.u32 2147483648, %v1117_v51  ;;  %v1127_v57 = vand.u32 2147483647, %v1117_v51  ;;  %vm1123_vm10 = vweird.f32 %v1117_v51 }
0x1a93   :  { %1500 = vpow2.f32 %v1383_v5 }
0x1a94   :  { %v1130_v60 = vor.u32 1.1754944e-38, %v1129_v55  ;;  %vm1128_vm11 = vcmp.eq.f32.partialorder %v1127_v57, 8.507059e+37 }
0x1a98   :  { %v1499_v52 = vpop.eup %1498 }
0x1a99   :  { %v1119_v53 = vmul.f32 %v1499_v52, %v1117_v51  ;;  %vm1124_vm9 = vweird.f32 %v1499_v52  ;;  %v1501_v6 = vpop.eup %1500 }
0x1a9a   :  { %vm1125_vm0 = vmor %vm1123_vm10, %vm1124_vm9  ;;  %v626_v7 = vadd.f32 1.0, %v1501_v6  ;;  %vm1344_vm10 = vcmask 31744  }
0x1a9b   :  { %v1120_v54 = vsub.f32 1.0, %v1119_v53 }
0x1a9c   :  { %1502 = vrcp.f32 %v626_v7  ;;  %v638_v20 = vand.u32 2147483648, %v626_v7  ;;  %vm632_vm13 = vweird.f32 %v626_v7  ;;  %v636_v21 = vand.u32 2147483647, %v626_v7 }
0x1a9d   :  { %v1121_v56 = vmul.f32 %v1499_v52, %v1120_v54 }
0x1a9e   :  { %v639_v24 = vor.u32 1.1754944e-38, %v638_v20  ;;  %vm637_vm15 = vcmp.eq.f32.partialorder %v636_v21, 8.507059e+37 }
0x1a9f   :  { %v1122_v59 = vadd.f32 %v1499_v52, %v1121_v56 }
0x1aa1   :  { %v1126_v61 = vsel %vm1125_vm0, %v1499_v52, %v1122_v59 }
0x1aa2   :  { %v1131_v62 = vsel %vm1128_vm11, %v1130_v60, %v1126_v61  ;;  %v1503_v9 = vpop.eup %1502 }
0x1aa3   :  { %v1133_v63 = vmul.f32 2.0, %v1131_v62  ;;  %v628_v12 = vmul.f32 %v1503_v9, %v626_v7  ;;  %vm633_vm12 = vweird.f32 %v1503_v9  ;;  %v1135_v29 = vmul.f32 %v1131_v62, %v1885_v42 }
0x1aa4   :  { %vm634_vm14 = vmor %vm632_vm13, %vm633_vm12  ;;  %v757_v42 = vmul.f32 %v746_v41, %v1596_v8 }
0x1aa5   :  { %v1409_v0 = vadd.f32 -1.0, %v1133_v63  ;;  %v629_v17 = vsub.f32 1.0, %v628_v12 }
0x1aa7   :  { %1137 = vrot.lane.b32.xlu0 %v1409_v0, %s1523_s27  ;;  %v630_v18 = vmul.f32 %v1503_v9, %v629_v17 }
0x1aa9   :  { %v631_v19 = vadd.f32 %v1503_v9, %v630_v18 }
0x1aab   :  { %v635_v58 = vsel %vm634_vm14, %v1503_v9, %v631_v19 }
0x1aac   :  { %v640_v39 = vsel %vm637_vm15, %v639_v24, %v635_v58 }
0x1aad   :  { %v642_v27 = vmul.f32 2.0, %v640_v39  ;;  %v644_v53 = vmul.f32 %v640_v39, %v1811_v23 }
0x1aaf   :  { %v1384_v28 = vadd.f32 -1.0, %v642_v27 }
0x1b19   :  { %v1138_v22 = vpop.permute.xlu0 %1137 }
0x1b1a   :  { %v1140_v26 = vmul.f32 %v1138_v22, %v1131_v62 }
0x1b1c   :  { %1142 = vrot.lane.b32.xlu1 %v1140_v26, %s1524_s28 }
0x1b24   :  { %646 = vrot.lane.b32.xlu1 %v1384_v28, %s1523_s27 }
0x1b8e   :  { %v1143_v31 = vpop.permute.xlu1 %1142 }
0x1b8f   :  { %v1145_v32 = vadd.f32 %v1143_v31, %v1135_v29 }
0x1b91   :  { %1504 = vtanh.f32 %v1145_v32 }
0x1b96   :  { %v647_v35 = vpop.permute.xlu1 %646 }
0x1b97   :  { %v1505_v25 = vpop.eup %1504  ;;  %v649_v14 = vmul.f32 %v647_v35, %v640_v39 }
0x1b98   :  { %1148 = vrot.lane.b32.xlu2 %v1505_v25, %s1523_s27 }
0x1bf2   :  { %v1149_v10 = vpop.permute.xlu2 %1148 }
0x1bf3   :  { %v1151_v34 = vmul.f32 %v1149_v10, %v1131_v62 }
0x1bf5   :  { %1153 = vrot.lane.b32.xlu0 %v1151_v34, %s1524_s28 }
0x1bfd   :  { %651 = vrot.lane.b32.xlu0 %v649_v14, %s1524_s28 }
0x1c67   :  { %v1154_v37 = vpop.permute.xlu0 %1153 }
0x1c68   :  { %1156 = vst.msk [vmem:[#allocation2 + $0x28] sm:$0xff] %vm136_vm8, %v1154_v37  ;;  %1410 = vmatmul.msk.f32.vlgmr.msra.gmra.mxu1 %vm136_vm8, %v1154_v37 }
0x1c6f   :  { %v1294_v38 = vld [vmem:[#allocation2 + $0x28] sm:$0xff]  ;;  %v652_v51 = vpop.permute.xlu0 %651 }
0x1c70   :  { %v1302_v15 = vmax.f32 %v1294_v38, 0.0  ;;  %v654_v56 = vadd.f32 %v652_v51, %v644_v53 }
0x1c72   :  { %1310 = vst.msk [vmem:[%s1971_s10 + $0x28] sm:$0xff] %vm136_vm8, %v1302_v15 }
0x1ce5   :  { %v1176_v43 = vpop.f32.mrf.mxu1 }
0x1ce6   :  { %v1179_v44 = vadd.f32 %v1176_v43, %v757_v42  ;;  %v1316_v43 = vld [vmem:[%s1973_s7 + $0x18] sm:$0xff] }
0x1ce7   :  { %1336 = vmatpush.msrb.mxu1 %v1316_v43 }
0x1ce8   :  { %v1411_v45 = vmul.f32 -1.442695, %v1179_v44  ;;  %v1315_v44 = vld [vmem:[%s1973_s7 + $0x10] sm:$0xff] }
0x1ce9   :  { %1337 = vmatpush.msrb.mxu1 %v1315_v44 }
0x1cea   :  { %1506 = vpow2.f32 %v1411_v45  ;;  %v1314_v45 = vld [vmem:[%s1973_s7 + $0x8] sm:$0xff] }
0x1ceb   :  { %1338 = vmatpush.msrb.mxu1 %v1314_v45 }
0x1cf0   :  { %v1507_v16 = vpop.eup %1506 }
0x1cf1   :  { %v1183_v46 = vadd.f32 1.0, %v1507_v16  ;;  %v1313_v16 = vld [vmem:[%s1973_s7] sm:$0xff] }
0x1cf2   :  { %1339 = vmatpush.msrb.mxu1 %v1313_v16 }
0x1cf3   :  { %1508 = vrcp.f32 %v1183_v46  ;;  %v1195_v49 = vand.u32 2147483648, %v1183_v46  ;;  %v1193_v33 = vand.u32 2147483647, %v1183_v46  ;;  %vm1189_vm2 = vweird.f32 %v1183_v46 }
0x1cf4   :  { %1510 = vtanh.f32 %v654_v56 }
0x1cf5   :  { %v1196_v13 = vor.u32 1.1754944e-38, %v1195_v49  ;;  %vm1194_vm4 = vcmp.eq.f32.partialorder %v1193_v33, 8.507059e+37 }
0x1cf9   :  { %v1509_v47 = vpop.eup %1508 }
0x1cfa   :  { %v1185_v48 = vmul.f32 %v1509_v47, %v1183_v46  ;;  %vm1190_vm1 = vweird.f32 %v1509_v47  ;;  %v1511_v59 = vpop.eup %1510 }
0x1cfb   :  { %vm1191_vm3 = vmor %vm1189_vm2, %vm1190_vm1 }
0x1cfc   :  { %v1186_v30 = vsub.f32 1.0, %v1185_v48 }
0x1cfe   :  { %v1187_v11 = vmul.f32 %v1509_v47, %v1186_v30  ;;  %v1423_v30 = vld [vmem:[%s1972_s8] ss:$0 sm:$0xff] }
0x1d00   :  { %v1188_v50 = vadd.f32 %v1509_v47, %v1187_v11 }
0x1d02   :  { %v1192_v52 = vsel %vm1191_vm3, %v1509_v47, %v1188_v50 }
0x1d03   :  { %v1197_v54 = vsel %vm1194_vm4, %v1196_v13, %v1192_v52 }
0x1d04   :  { %v1199_v55 = vmul.f32 2.0, %v1197_v54  ;;  %v1201_v0 = vmul.f32 %v1197_v54, %v1145_v32 }
0x1d06   :  { %v1412_v57 = vadd.f32 -1.0, %v1199_v55 }
0x1d08   :  { %1203 = vrot.lane.b32.xlu2 %v1412_v57, %s1523_s27 }
0x1d10   :  { %657 = vrot.lane.b32.xlu2 %v1511_v59, %s1523_s27 }
0x1d62   :  { %v1204_v60 = vpop.permute.xlu2 %1203 }
0x1d63   :  { %v1206_v61 = vmul.f32 %v1204_v60, %v1197_v54 }
0x1d65   :  { %1208 = vrot.lane.b32.xlu1 %v1206_v61, %s1524_s28 }
0x1d6a   :  { %v658_v62 = vpop.permute.xlu2 %657 }
0x1d6b   :  { %v660_v63 = vmul.f32 %v658_v62, %v640_v39 }
0x1d6d   :  { %662 = vrot.lane.b32.xlu1 %v660_v63, %s1524_s28 }
0x1dd7   :  { %v1209_v23 = vpop.permute.xlu1 %1208 }
0x1dd8   :  { %v1211_v1 = vadd.f32 %v1209_v23, %v1201_v0 }
0x1dda   :  { %1512 = vtanh.f32 %v1211_v1 }
0x1ddf   :  { %v663_v2 = vpop.permute.xlu1 %662 }
0x1de0   :  { %v1513_v3 = vpop.eup %1512  ;;  %665 = vst.msk [vmem:[#allocation2 + $0x38] sm:$0xff] %vm136_vm8, %v663_v2 }
0x1de1   :  { %1214 = vrot.lane.b32.xlu0 %v1513_v3, %s1523_s27 }
0x1de7   :  { %v673_v4 = vld [vmem:[#allocation2 + $0x38] sm:$0xff] }
0x1de8   :  { %1392 = vmatmul.msk.f32.gmra.mxu3 %vm136_vm8, %v673_v4 }
0x1e53   :  { %v1215_v5 = vpop.permute.xlu0 %1214 }
0x1e54   :  { %v1217_v6 = vmul.f32 %v1215_v5, %v1197_v54 }
0x1e56   :  { %1219 = vrot.lane.b32.xlu2 %v1217_v6, %s1524_s28 }
0x1e6b   :  { %v748_v17 = vpop.f32.mrf.mxu3 }
0x1e6c   :  { %v749_v18 = vadd.f32 %v1801_v36, %v748_v17 }
0x1e6e   :  { %v758_v19 = vmul.f32 %v749_v18, %v1596_v8 }
0x1eb0   :  { %v1220_v7 = vpop.permute.xlu2 %1219 }
0x1eb1   :  { %1222 = vst.msk [vmem:[#allocation2 + $0x30] sm:$0xff] %vm136_vm8, %v1220_v7  ;;  %1413 = vmatmul.msk.f32.vlgmr.msrb.gmra.mxu2 %vm136_vm8, %v1220_v7 }
0x1eb8   :  { %v1295_v9 = vld [vmem:[#allocation2 + $0x30] sm:$0xff] }
0x1eb9   :  { %v1303_v12 = vmax.f32 %v1295_v9, 0.0 }
0x1ebb   :  { %1311 = vst.msk [vmem:[%s1971_s10 + $0x30] sm:$0xff] %vm136_vm8, %v1303_v12 }
0x1f34   :  { %v1242_v20 = vpop.f32.mrf.mxu2 }
0x1f35   :  { %v1245_v21 = vadd.f32 %v1242_v20, %v758_v19 }
0x1f37   :  { %v1414_v58 = vmul.f32 -1.442695, %v1245_v21 }
0x1f39   :  { %1514 = vpow2.f32 %v1414_v58 }
0x1f3f   :  { %v1515_v22 = vpop.eup %1514 }
0x1f40   :  { %v1249_v24 = vadd.f32 1.0, %v1515_v22 }
0x1f42   :  { %1516 = vrcp.f32 %v1249_v24  ;;  %v1261_v28 = vand.u32 2147483648, %v1249_v24  ;;  %v1259_v31 = vand.u32 2147483647, %v1249_v24  ;;  %vm1255_vm6 = vweird.f32 %v1249_v24 }
0x1f44   :  { %v1262_v36 = vor.u32 1.1754944e-38, %v1261_v28  ;;  %vm1260_vm9 = vcmp.eq.f32.partialorder %v1259_v31, 8.507059e+37 }
0x1f48   :  { %v1517_v26 = vpop.eup %1516 }
0x1f49   :  { %v1251_v39 = vmul.f32 %v1517_v26, %v1249_v24  ;;  %vm1256_vm5 = vweird.f32 %v1517_v26 }
0x1f4a   :  { %vm1257_vm7 = vmor %vm1255_vm6, %vm1256_vm5 }
0x1f4b   :  { %v1252_v27 = vsub.f32 1.0, %v1251_v39 }
0x1f4d   :  { %v1253_v29 = vmul.f32 %v1517_v26, %v1252_v27 }
0x1f4f   :  { %v1254_v32 = vadd.f32 %v1517_v26, %v1253_v29 }
0x1f51   :  { %v1258_v25 = vsel %vm1257_vm7, %v1517_v26, %v1254_v32 }
0x1f52   :  { %v1263_v8 = vsel %vm1260_vm9, %v1262_v36, %v1258_v25 }
0x1f53   :  { %v1265_v10 = vmul.f32 2.0, %v1263_v8  ;;  %v1267_v37 = vmul.f32 %v1263_v8, %v1211_v1 }
0x1f55   :  { %v1415_v34 = vadd.f32 -1.0, %v1265_v10 }
0x1f57   :  { %1269 = vrot.lane.b32.xlu0 %v1415_v34, %s1523_s27 }
0x1fc9   :  { %v1270_v35 = vpop.permute.xlu0 %1269 }
0x1fca   :  { %v1272_v14 = vmul.f32 %v1270_v35, %v1263_v8 }
0x1fcc   :  { %1274 = vrot.lane.b32.xlu1 %v1272_v14, %s1524_s28 }
0x203e   :  { %v1275_v38 = vpop.permute.xlu1 %1274 }
0x203f   :  { %v1277_v15 = vadd.f32 %v1275_v38, %v1267_v37 }
0x2041   :  { %1518 = vtanh.f32 %v1277_v15 }
0x2047   :  { %v1519_v40 = vpop.eup %1518 }
0x2048   :  { %1280 = vrot.lane.b32.xlu2 %v1519_v40, %s1523_s27 }
0x20a2   :  { %v1281_v41 = vpop.permute.xlu2 %1280 }
0x20a3   :  { %v1283_v42 = vmul.f32 %v1281_v41, %v1263_v8 }
0x20a5   :  { %1285 = vrot.lane.b32.xlu0 %v1283_v42, %s1524_s28 }
0x2117   :  { %v1286_v46 = vpop.permute.xlu0 %1285 }
0x2118   :  { %1288 = vst.msk [vmem:[#allocation2 + $0x38] sm:$0xff] %vm136_vm8, %v1286_v46 }
0x211f   :  { %v1296_v47 = vld [vmem:[#allocation2 + $0x38] sm:$0xff] }
0x2120   :  { %v1304_v48 = vmax.f32 %v1296_v47, 0.0 }
0x2122   :  { %1312 = vst.msk [vmem:[%s1971_s10 + $0x38] sm:$0xff] %vm136_vm8, %v1304_v48  ;;  %1416 = vmatmul.msk.f32.vlgmr.msrb.gmra.mxu1 %vm136_vm8, %v1304_v48 }
0x219f   :  { %v1341_v49 = vpop.f32.mrf.mxu1 }
0x21a0   :  { %v1342_v11 = vadd.f32 %v1423_v30, %v1341_v49 }
0x21a2   :  { %1345 = vst.msk [vmem:[%s1974_s9] sm:$0xff] %vm1344_vm10, %v1342_v11 }

</bundles_post_ra>
